<compile_context>
chip_gen: v7x
topology: tpu7x:2x2x1
jax: 0.10.0
libtpu: 0.0.40
codegen_flags: <defaults>
</compile_context>

<pallas_src>
import jax
import jax.numpy as jnp
from jax import lax
from jax.experimental import pallas as pl
from jax.experimental.pallas import tpu as pltpu


# -----------------------------------------------------------------------------
# Pallas kernel
# -----------------------------------------------------------------------------
def make_glblock_kernel(H, W, Cin, Cout, nf, L):
    HW = H * W
    OFFS = [(dy, dx) for dy in (-1, 0, 1) for dx in (-1, 0, 1)]  # tap order ky*3+kx

    def kernel(x_ref, m_ref, tmask_ref, wc_ref, pw_ref, wl_ref, bl_ref,
               wm_ref, bm_ref, y_ref, sm_ref, col_ref, cat_ref):
        # Pre-broadcast the space mask over channels once (reused every layer).
        maskb = jnp.broadcast_to(m_ref[...], (Cin, HW))      # (Cin, HW)

        def build_im2col(act, C):
            # act: (C, HW) f32. Writes the 9 shifted/masked taps into
            # col_ref[: 9*C] (bf16), tap-major then channel.
            for t, (dy, dx) in enumerate(OFFS):
                off = dy * W + dx
                if off == 0:
                    shifted = act
                else:
                    # result[p] = act[(p + off) mod HW]; wrap-around lands only
                    # in positions that the boundary mask zeroes out.
                    shifted = pltpu.roll(act, shift=(-off) % HW, axis=1)
                if not (dy == 0 and dx == 0):
                    shifted = shifted * tmask_ref[t:t + 1, :]   # (1, HW) bcast
                col_ref[t * C:(t + 1) * C, :] = shifted.astype(col_ref.dtype)

        cur = x_ref[...]                                      # (Cin, HW) f32
        for i in range(L):
            build_im2col(cur, Cin)
            # 3x3 conv as one MXU matmul: (Cin, 9*Cin) x (9*Cin, HW)
            conv = jnp.dot(wc_ref[i], col_ref[...],
                           preferred_element_type=jnp.float32)
            a = pw_ref[i]                                     # (Cin, 1) PReLU slope
            if i == 0:
                # conv_head = Sequential(Conv, PReLU), then x * space_mask
                conv = jnp.where(conv >= 0.0, conv, a * conv)
                conv = conv * maskb
            else:
                # convblock: conv, x * space_mask, then PReLU
                conv = conv * maskb
                conv = jnp.where(conv >= 0.0, conv, a * conv)
            cur = conv
            # stash this layer's output for the channel-concat fed to conv_last
            cat_ref[i * Cin:(i + 1) * Cin, :] = cur.astype(cat_ref.dtype)

        # conv_last (1x1, bias): single matmul over the concat slab.
        y = jnp.dot(wl_ref[...], cat_ref[...],
                    preferred_element_type=jnp.float32) + bl_ref[...]
        y_ref[...] = y.astype(y_ref.dtype)

        # conv_mask (nf -> 2, 3x3, bias) on channels [4:] (cheap sublane slice).
        feat = y[4:, :]                                       # (nf, HW)
        build_im2col(feat, nf)
        sm = jnp.dot(wm_ref[...], col_ref[0:9 * nf, :],
                     preferred_element_type=jnp.float32) + bm_ref[...]
        sm_ref[...] = sm.astype(sm_ref.dtype)

    return kernel


def glblock_pallas(x_nchw, space_mask, wc, pw, wl, bl, wm, bm):
    B, Cin, H, W = x_nchw.shape
    HW = H * W
    Cout = wl.shape[0]
    nf = Cout - 4
    L = wc.shape[0]

    # NCHW flattens natively to the kernel's (C, H*W) layout: reshape only.
    x2 = x_nchw.reshape(B, Cin, HW)
    m2 = space_mask.reshape(B, 1, HW)

    # Per-tap boundary-validity masks (implement zero padding): shape (9, HW).
    row = jnp.arange(HW, dtype=jnp.int32) // W
    col = jnp.arange(HW, dtype=jnp.int32) % W
    tm_list = []
    for dy in (-1, 0, 1):
        for dx in (-1, 0, 1):
            m = jnp.ones((HW,), jnp.float32)
            if dy == -1:
                m = m * (row >= 1)
            if dy == 1:
                m = m * (row <= H - 2)
            if dx == -1:
                m = m * (col >= 1)
            if dx == 1:
                m = m * (col <= W - 2)
            tm_list.append(m)
    tmask = jnp.stack(tm_list, axis=0).astype(jnp.float32)      # (9, HW)

    kernel = make_glblock_kernel(H, W, Cin, Cout, nf, L)

    def full_spec(arr):
        zeros = (0,) * arr.ndim
        return pl.BlockSpec(arr.shape, lambda b, z=zeros: z)

    y, sm = pl.pallas_call(
        kernel,
        out_shape=(jax.ShapeDtypeStruct((B, Cout, HW), jnp.float32),
                   jax.ShapeDtypeStruct((B, 2, HW), jnp.float32)),
        grid_spec=pltpu.PrefetchScalarGridSpec(
            num_scalar_prefetch=0,
            grid=(B,),
            in_specs=[
                pl.BlockSpec((None, Cin, HW), lambda b: (b, 0, 0)),
                pl.BlockSpec((None, 1, HW), lambda b: (b, 0, 0)),
                full_spec(tmask), full_spec(wc), full_spec(pw),
                full_spec(wl), full_spec(bl), full_spec(wm), full_spec(bm),
            ],
            out_specs=[
                pl.BlockSpec((None, Cout, HW), lambda b: (b, 0, 0)),
                pl.BlockSpec((None, 2, HW), lambda b: (b, 0, 0)),
            ],
            scratch_shapes=[
                pltpu.VMEM((9 * Cin, HW), jnp.bfloat16),   # im2col slab
                pltpu.VMEM((L * Cin, HW), jnp.bfloat16),   # channel-concat slab
            ],
        ),
        compiler_params=pltpu.CompilerParams(
            dimension_semantics=("parallel",)),
    )(x2, m2, tmask, wc, pw, wl, bl, wm, bm)
    return y.reshape(B, Cout, H, W), sm.reshape(B, 2, H, W)


# -----------------------------------------------------------------------------
# Plain-JAX glue (warp, resize) — matches the PyTorch helpers' semantics
# -----------------------------------------------------------------------------
def warp(x, flo):
    # Bilinear backward warp (grid_sample, align_corners=True, border padding).
    B, C, H, W = x.shape
    gy, gx = jnp.meshgrid(jnp.arange(H, dtype=jnp.float32),
                          jnp.arange(W, dtype=jnp.float32), indexing='ij')
    sx = gx[None] + flo[:, 0]
    sy = gy[None] + flo[:, 1]
    x0 = jnp.floor(sx)
    y0 = jnp.floor(sy)
    wx1 = sx - x0
    wy1 = sy - y0
    wx0 = 1.0 - wx1
    wy0 = 1.0 - wy1
    x0i = jnp.clip(x0, 0, W - 1).astype(jnp.int32)
    x1i = jnp.clip(x0 + 1, 0, W - 1).astype(jnp.int32)
    y0i = jnp.clip(y0, 0, H - 1).astype(jnp.int32)
    y1i = jnp.clip(y0 + 1, 0, H - 1).astype(jnp.int32)
    b_idx = jnp.arange(B)[:, None, None]

    def g(yi, xi):
        return x[b_idx, :, yi, xi]   # -> (B, H, W, C)

    out = (g(y0i, x0i) * (wy0 * wx0)[..., None] +
           g(y0i, x1i) * (wy0 * wx1)[..., None] +
           g(y1i, x0i) * (wy1 * wx0)[..., None] +
           g(y1i, x1i) * (wy1 * wx1)[..., None])
    return jnp.transpose(out, (0, 3, 1, 2))


def nearest_up2(x):  # NCHW, F.interpolate(scale_factor=2, mode='nearest')
    return jnp.repeat(jnp.repeat(x, 2, axis=2), 2, axis=3)


def bilinear_up2(x):  # NCHW, F.interpolate(scale_factor=2, bilinear, align_corners=False)
    B, C, H, W = x.shape

    def coords(n_in, n_out):
        s = (jnp.arange(n_out, dtype=jnp.float32) + 0.5) * (n_in / n_out) - 0.5
        s = jnp.maximum(s, 0.0)
        i0 = jnp.floor(s).astype(jnp.int32)
        i1 = jnp.minimum(i0 + 1, n_in - 1)
        w1 = s - i0.astype(jnp.float32)
        return i0, i1, 1.0 - w1, w1

    y0, y1, wy0, wy1 = coords(H, 2 * H)
    x0, x1, wx0, wx1 = coords(W, 2 * W)
    top = (x[:, :, y0, :] * wy0[None, None, :, None] +
           x[:, :, y1, :] * wy1[None, None, :, None])
    return top[:, :, :, x0] * wx0 + top[:, :, :, x1] * wx1


# -----------------------------------------------------------------------------
# Main
# -----------------------------------------------------------------------------
if __name__ == "__main__":
    B, H, W = 2, 16, 16
    nf = 8
    cfeat = 4
    n_layers = 2
    L = n_layers + 1
    in_nf = 3 * cfeat + 4   # cat([feat_0_warp, feat_1_warp, feat_dense, flow])
    Cout = 4 + nf

    key = jax.random.PRNGKey(0)
    keys = jax.random.split(key, 12)

    # inputs (NCHW, like PyTorch)
    feat_0 = jax.random.normal(keys[0], (B, cfeat, H, W), jnp.float32)
    feat_1 = jax.random.normal(keys[1], (B, cfeat, H, W), jnp.float32)
    feat_dense = jax.random.normal(keys[2], (B, cfeat, H, W), jnp.float32)
    flow = jax.random.normal(keys[3], (B, 4, H, W), jnp.float32) * 2.0
    space_mask = jax.random.uniform(keys[4], (B, 1, H, W), jnp.float32)

    # deterministic parameter init (PyTorch weight layouts)
    w_head = jax.random.normal(keys[5], (in_nf, in_nf, 3, 3), jnp.float32) * 0.1
    w_blocks = [jax.random.normal(keys[6 + i], (in_nf, in_nf, 3, 3), jnp.float32) * 0.1
                for i in range(n_layers)]
    prelu_ws = [jnp.full((in_nf,), 0.25, jnp.float32) for _ in range(L)]
    w_last = jax.random.normal(keys[8], (Cout, in_nf * L, 1, 1), jnp.float32) * 0.1
    b_last = jax.random.normal(keys[9], (Cout,), jnp.float32) * 0.1
    w_mask = jax.random.normal(keys[10], (2, nf, 3, 3), jnp.float32) * 0.1
    b_mask = jax.random.normal(keys[11], (2,), jnp.float32) * 0.1

    # convert to the layouts the kernel expects
    #   3x3 conv weights -> (L, Cout, 9*Cin) with im2col row order (tap, ci); bf16
    w_stack = jnp.stack([w_head] + w_blocks, axis=0)                    # (L, Co, Ci, 3, 3)
    wc = jnp.transpose(w_stack, (0, 1, 3, 4, 2)).reshape(
        L, in_nf, 9 * in_nf).astype(jnp.bfloat16)
    pw = jnp.stack(prelu_ws, axis=0).reshape(L, in_nf, 1)               # f32
    wl = w_last[:, :, 0, 0].astype(jnp.bfloat16)                        # (Cout, L*Cin)
    bl = b_last.reshape(Cout, 1)                                        # f32
    wm = jnp.transpose(w_mask, (0, 2, 3, 1)).reshape(2, 9 * nf).astype(jnp.bfloat16)
    bm = b_mask.reshape(2, 1)                                           # f32

    def forward(feat_0, feat_1, feat_dense, flow, space_mask):
        f0w = warp(feat_0, flow[:, :2])
        f1w = warp(feat_1, flow[:, 2:4])
        x = jnp.concatenate([f0w, f1w, feat_dense, flow], axis=1)
        space_mask_up = nearest_up2(space_mask)

        y, smn = glblock_pallas(x, space_mask, wc, pw, wl, bl, wm, bm)

        y_up = bilinear_up2(y)
        smn_up = bilinear_up2(smn)
        flow_out = y_up[:, :4]
        feat_t = y_up[:, 4:]
        # eval-mode branch (self.training == False)
        # TODO(synk): training-mode gumbel_softmax branch (stochastic) not implemented.
        space_mask_next = (smn_up[:, :1] > smn_up[:, 1:]).astype(jnp.float32) * space_mask_up
        return flow_out, feat_t, space_mask_next, x, y, smn

    outs = jax.jit(forward)(feat_0, feat_1, feat_dense, flow, space_mask)
    flow_out, feat_t, space_mask_next, x_cat, y_ker, sm_ker = jax.block_until_ready(outs)

    # --- pure-JAX f32 reference for the Pallas-kernel portion ---
    def conv2d(x, w, b=None, pad=1):
        y = lax.conv_general_dilated(x, w, (1, 1), [(pad, pad), (pad, pad)],
                                     dimension_numbers=('NCHW', 'OIHW', 'NCHW'))
        if b is not None:
            y = y + b.reshape(1, -1, 1, 1)
        return y

    def prelu(x, a):
        return jnp.where(x >= 0, x, a.reshape(1, -1, 1, 1) * x)

    h = prelu(conv2d(x_cat, w_head), prelu_ws[0]) * space_mask
    outs_l = [h]
    for i in range(n_layers):
        h = conv2d(h, w_blocks[i]) * space_mask
        h = prelu(h, prelu_ws[i + 1])
        outs_l.append(h)
    y_ref = conv2d(jnp.concatenate(outs_l, axis=1), w_last, b_last, pad=0)
    sm_ref = conv2d(y_ref[:, 4:], w_mask, b_mask, pad=1)

    assert flow_out.shape == (B, 4, 2 * H, 2 * W)
    assert feat_t.shape == (B, nf, 2 * H, 2 * W)
    assert space_mask_next.shape == (B, 1, 2 * H, 2 * W)
    # bf16 matmul inputs with f32 accumulation -> slightly relaxed tolerance
    assert jnp.allclose(y_ker, y_ref, atol=2e-2, rtol=2e-2), "conv stack mismatch"
    assert jnp.allclose(sm_ker, sm_ref, atol=2e-2, rtol=2e-2), "conv_mask mismatch"

    print("KERNEL_OK")
</pallas_src>

<mosaic_0001>
module attributes {stable_mosaic.version = 11 : i64} {
  func.func @kernel(%arg0: i32, %arg1: memref<1x16x256xf32, #tpu.memory_space<vmem>>, %arg2: memref<1x1x256xf32, #tpu.memory_space<vmem>>, %arg3: memref<9x256xf32, #tpu.memory_space<vmem>>, %arg4: memref<3x16x144xbf16, #tpu.memory_space<vmem>>, %arg5: memref<3x16x1xf32, #tpu.memory_space<vmem>>, %arg6: memref<12x48xbf16, #tpu.memory_space<vmem>>, %arg7: memref<12x1xf32, #tpu.memory_space<vmem>>, %arg8: memref<2x72xbf16, #tpu.memory_space<vmem>>, %arg9: memref<2x1xf32, #tpu.memory_space<vmem>>, %arg10: memref<1x12x256xf32, #tpu.memory_space<vmem>>, %arg11: memref<1x2x256xf32, #tpu.memory_space<vmem>>, %arg12: memref<144x256xbf16, #tpu.memory_space<vmem>>, %arg13: memref<48x256xbf16, #tpu.memory_space<vmem>>) attributes {dimension_semantics = [#tpu.dimension_semantics<parallel>], iteration_bounds = array<i64: 2>, scalar_prefetch = 0 : i64, scratch_operands = 2 : i64, tpu.core_type = #tpu.core_type<tc>, window_params = [{transform_indices = @transform_0, window_bounds = array<i64: 1, 16, 256>}, {transform_indices = @transform_1, window_bounds = array<i64: 1, 1, 256>}, {pipeline_mode = #tpu.pipeline_mode<synchronous>, transform_indices = @transform_2, window_bounds = array<i64: 9, 256>}, {pipeline_mode = #tpu.pipeline_mode<synchronous>, transform_indices = @transform_3, window_bounds = array<i64: 3, 16, 144>}, {pipeline_mode = #tpu.pipeline_mode<synchronous>, transform_indices = @transform_4, window_bounds = array<i64: 3, 16, 1>}, {pipeline_mode = #tpu.pipeline_mode<synchronous>, transform_indices = @transform_5, window_bounds = array<i64: 12, 48>}, {pipeline_mode = #tpu.pipeline_mode<synchronous>, transform_indices = @transform_6, window_bounds = array<i64: 12, 1>}, {pipeline_mode = #tpu.pipeline_mode<synchronous>, transform_indices = @transform_7, window_bounds = array<i64: 2, 72>}, {pipeline_mode = #tpu.pipeline_mode<synchronous>, transform_indices = @transform_8, window_bounds = array<i64: 2, 1>}, {transform_indices = @transform_9, window_bounds = array<i64: 1, 12, 256>}, {transform_indices = @transform_10, window_bounds = array<i64: 1, 2, 256>}]} {
    %c0 = arith.constant 0 : index
    %c0_0 = arith.constant 0 : index
    %c0_1 = arith.constant 0 : index
    %0 = vector.load %arg2[%c0, %c0_0, %c0_1] : memref<1x1x256xf32, #tpu.memory_space<vmem>>, vector<1x1x256xf32>
    %1 = vector.shape_cast %0 : vector<1x1x256xf32> to vector<1x256xf32>
    %2 = vector.shape_cast %1 : vector<1x256xf32> to vector<1x256xf32>
    %3 = vector.broadcast %2 : vector<1x256xf32> to vector<16x256xf32>
    %c0_2 = arith.constant 0 : index
    %c0_3 = arith.constant 0 : index
    %c0_4 = arith.constant 0 : index
    %4 = vector.load %arg1[%c0_2, %c0_3, %c0_4] : memref<1x16x256xf32, #tpu.memory_space<vmem>>, vector<1x16x256xf32>
    %5 = vector.shape_cast %4 : vector<1x16x256xf32> to vector<16x256xf32>
    %c17_i32 = arith.constant 17 : i32
    %6 = tpu.dynamic_rotate %5 by %c17_i32 dim 1 : vector<16x256xf32>, i32 -> vector<16x256xf32>
    %c0_5 = arith.constant 0 : index
    %c0_6 = arith.constant 0 : index
    %7 = vector.load %arg3[%c0_5, %c0_6] : memref<9x256xf32, #tpu.memory_space<vmem>>, vector<1x256xf32>
    %8 = vector.broadcast %7 : vector<1x256xf32> to vector<16x256xf32>
    %9 = arith.mulf %6, %8 : vector<16x256xf32>
    %10 = arith.truncf %9 : vector<16x256xf32> to vector<16x256xbf16>
    %c0_7 = arith.constant 0 : index
    %c0_8 = arith.constant 0 : index
    %11 = vector.load %arg12[%c0_7, %c0_8] : memref<144x256xbf16, #tpu.memory_space<vmem>>, vector<16x256xbf16>
    tpu.vector_store %arg12[%c0_7, %c0_8], %10 {strides = array<i32>} : memref<144x256xbf16, #tpu.memory_space<vmem>>, vector<16x256xbf16>,
    %c16_i32 = arith.constant 16 : i32
    %12 = tpu.dynamic_rotate %5 by %c16_i32 dim 1 : vector<16x256xf32>, i32 -> vector<16x256xf32>
    %c1 = arith.constant 1 : index
    %c0_9 = arith.constant 0 : index
    %13 = vector.load %arg3[%c1, %c0_9] : memref<9x256xf32, #tpu.memory_space<vmem>>, vector<1x256xf32>
    %14 = vector.broadcast %13 : vector<1x256xf32> to vector<16x256xf32>
    %15 = arith.mulf %12, %14 : vector<16x256xf32>
    %16 = arith.truncf %15 : vector<16x256xf32> to vector<16x256xbf16>
    %c16 = arith.constant 16 : index
    %c0_10 = arith.constant 0 : index
    %17 = vector.load %arg12[%c16, %c0_10] : memref<144x256xbf16, #tpu.memory_space<vmem>>, vector<16x256xbf16>
    tpu.vector_store %arg12[%c16, %c0_10], %16 {strides = array<i32>} : memref<144x256xbf16, #tpu.memory_space<vmem>>, vector<16x256xbf16>,
    %c15_i32 = arith.constant 15 : i32
    %18 = tpu.dynamic_rotate %5 by %c15_i32 dim 1 : vector<16x256xf32>, i32 -> vector<16x256xf32>
    %c2 = arith.constant 2 : index
    %c0_11 = arith.constant 0 : index
    %19 = vector.load %arg3[%c2, %c0_11] : memref<9x256xf32, #tpu.memory_space<vmem>>, vector<1x256xf32>
    %20 = vector.broadcast %19 : vector<1x256xf32> to vector<16x256xf32>
    %21 = arith.mulf %18, %20 : vector<16x256xf32>
    %22 = arith.truncf %21 : vector<16x256xf32> to vector<16x256xbf16>
    %c32 = arith.constant 32 : index
    %c0_12 = arith.constant 0 : index
    %23 = vector.load %arg12[%c32, %c0_12] : memref<144x256xbf16, #tpu.memory_space<vmem>>, vector<16x256xbf16>
    tpu.vector_store %arg12[%c32, %c0_12], %22 {strides = array<i32>} : memref<144x256xbf16, #tpu.memory_space<vmem>>, vector<16x256xbf16>,
    %c1_i32 = arith.constant 1 : i32
    %24 = tpu.dynamic_rotate %5 by %c1_i32 dim 1 : vector<16x256xf32>, i32 -> vector<16x256xf32>
    %c3 = arith.constant 3 : index
    %c0_13 = arith.constant 0 : index
    %25 = vector.load %arg3[%c3, %c0_13] : memref<9x256xf32, #tpu.memory_space<vmem>>, vector<1x256xf32>
    %26 = vector.broadcast %25 : vector<1x256xf32> to vector<16x256xf32>
    %27 = arith.mulf %24, %26 : vector<16x256xf32>
    %28 = arith.truncf %27 : vector<16x256xf32> to vector<16x256xbf16>
    %c48 = arith.constant 48 : index
    %c0_14 = arith.constant 0 : index
    %29 = vector.load %arg12[%c48, %c0_14] : memref<144x256xbf16, #tpu.memory_space<vmem>>, vector<16x256xbf16>
    tpu.vector_store %arg12[%c48, %c0_14], %28 {strides = array<i32>} : memref<144x256xbf16, #tpu.memory_space<vmem>>, vector<16x256xbf16>,
    %30 = arith.truncf %5 : vector<16x256xf32> to vector<16x256xbf16>
    %c64 = arith.constant 64 : index
    %c0_15 = arith.constant 0 : index
    %31 = vector.load %arg12[%c64, %c0_15] : memref<144x256xbf16, #tpu.memory_space<vmem>>, vector<16x256xbf16>
    tpu.vector_store %arg12[%c64, %c0_15], %30 {strides = array<i32>} : memref<144x256xbf16, #tpu.memory_space<vmem>>, vector<16x256xbf16>,
    %c255_i32 = arith.constant 255 : i32
    %32 = tpu.dynamic_rotate %5 by %c255_i32 dim 1 : vector<16x256xf32>, i32 -> vector<16x256xf32>
    %c5 = arith.constant 5 : index
    %c0_16 = arith.constant 0 : index
    %33 = vector.load %arg3[%c5, %c0_16] : memref<9x256xf32, #tpu.memory_space<vmem>>, vector<1x256xf32>
    %34 = vector.broadcast %33 : vector<1x256xf32> to vector<16x256xf32>
    %35 = arith.mulf %32, %34 : vector<16x256xf32>
    %36 = arith.truncf %35 : vector<16x256xf32> to vector<16x256xbf16>
    %c80 = arith.constant 80 : index
    %c0_17 = arith.constant 0 : index
    %37 = vector.load %arg12[%c80, %c0_17] : memref<144x256xbf16, #tpu.memory_space<vmem>>, vector<16x256xbf16>
    tpu.vector_store %arg12[%c80, %c0_17], %36 {strides = array<i32>} : memref<144x256xbf16, #tpu.memory_space<vmem>>, vector<16x256xbf16>,
    %c241_i32 = arith.constant 241 : i32
    %38 = tpu.dynamic_rotate %5 by %c241_i32 dim 1 : vector<16x256xf32>, i32 -> vector<16x256xf32>
    %c6 = arith.constant 6 : index
    %c0_18 = arith.constant 0 : index
    %39 = vector.load %arg3[%c6, %c0_18] : memref<9x256xf32, #tpu.memory_space<vmem>>, vector<1x256xf32>
    %40 = vector.broadcast %39 : vector<1x256xf32> to vector<16x256xf32>
    %41 = arith.mulf %38, %40 : vector<16x256xf32>
    %42 = arith.truncf %41 : vector<16x256xf32> to vector<16x256xbf16>
    %c96 = arith.constant 96 : index
    %c0_19 = arith.constant 0 : index
    %43 = vector.load %arg12[%c96, %c0_19] : memref<144x256xbf16, #tpu.memory_space<vmem>>, vector<16x256xbf16>
    tpu.vector_store %arg12[%c96, %c0_19], %42 {strides = array<i32>} : memref<144x256xbf16, #tpu.memory_space<vmem>>, vector<16x256xbf16>,
    %c240_i32 = arith.constant 240 : i32
    %44 = tpu.dynamic_rotate %5 by %c240_i32 dim 1 : vector<16x256xf32>, i32 -> vector<16x256xf32>
    %c7 = arith.constant 7 : index
    %c0_20 = arith.constant 0 : index
    %45 = vector.load %arg3[%c7, %c0_20] : memref<9x256xf32, #tpu.memory_space<vmem>>, vector<1x256xf32>
    %46 = vector.broadcast %45 : vector<1x256xf32> to vector<16x256xf32>
    %47 = arith.mulf %44, %46 : vector<16x256xf32>
    %48 = arith.truncf %47 : vector<16x256xf32> to vector<16x256xbf16>
    %c112 = arith.constant 112 : index
    %c0_21 = arith.constant 0 : index
    %49 = vector.load %arg12[%c112, %c0_21] : memref<144x256xbf16, #tpu.memory_space<vmem>>, vector<16x256xbf16>
    tpu.vector_store %arg12[%c112, %c0_21], %48 {strides = array<i32>} : memref<144x256xbf16, #tpu.memory_space<vmem>>, vector<16x256xbf16>,
    %c239_i32 = arith.constant 239 : i32
    %50 = tpu.dynamic_rotate %5 by %c239_i32 dim 1 : vector<16x256xf32>, i32 -> vector<16x256xf32>
    %c8 = arith.constant 8 : index
    %c0_22 = arith.constant 0 : index
    %51 = vector.load %arg3[%c8, %c0_22] : memref<9x256xf32, #tpu.memory_space<vmem>>, vector<1x256xf32>
    %52 = vector.broadcast %51 : vector<1x256xf32> to vector<16x256xf32>
    %53 = arith.mulf %50, %52 : vector<16x256xf32>
    %54 = arith.truncf %53 : vector<16x256xf32> to vector<16x256xbf16>
    %c128 = arith.constant 128 : index
    %c0_23 = arith.constant 0 : index
    %55 = vector.load %arg12[%c128, %c0_23] : memref<144x256xbf16, #tpu.memory_space<vmem>>, vector<16x256xbf16>
    tpu.vector_store %arg12[%c128, %c0_23], %54 {strides = array<i32>} : memref<144x256xbf16, #tpu.memory_space<vmem>>, vector<16x256xbf16>,
    %c0_24 = arith.constant 0 : index
    %c0_25 = arith.constant 0 : index
    %c0_26 = arith.constant 0 : index
    %56 = vector.load %arg4[%c0_24, %c0_25, %c0_26] : memref<3x16x144xbf16, #tpu.memory_space<vmem>>, vector<1x16x144xbf16>
    %57 = vector.shape_cast %56 : vector<1x16x144xbf16> to vector<16x144xbf16>
    %c0_27 = arith.constant 0 : index
    %c0_28 = arith.constant 0 : index
    %58 = vector.load %arg12[%c0_27, %c0_28] : memref<144x256xbf16, #tpu.memory_space<vmem>>, vector<144x256xbf16>
    %cst = arith.constant dense<0.000000e+00> : vector<16x256xf32>
    %59 = tpu.matmul %57, %58, %cst {dimension_numbers = #tpu.dot_dimension_numbers<[1], [0], [0], [1], [0, 0, 1, 1], [], []>} : vector<16x144xbf16>, vector<144x256xbf16>, vector<16x256xf32> -> vector<16x256xf32>
    %c0_29 = arith.constant 0 : index
    %c0_30 = arith.constant 0 : index
    %c0_31 = arith.constant 0 : index
    %60 = vector.load %arg5[%c0_29, %c0_30, %c0_31] : memref<3x16x1xf32, #tpu.memory_space<vmem>>, vector<1x16x1xf32>
    %61 = vector.shape_cast %60 : vector<1x16x1xf32> to vector<16x1xf32>
    %cst_32 = arith.constant 0.000000e+00 : f32
    %62 = vector.broadcast %cst_32 : f32 to vector<16x256xf32>
    %63 = arith.cmpf oge, %59, %62 : vector<16x256xf32>
    %64 = vector.broadcast %61 : vector<16x1xf32> to vector<16x256xf32>
    %65 = arith.mulf %64, %59 : vector<16x256xf32>
    %66 = arith.select %63, %59, %65 : vector<16x256xi1>, vector<16x256xf32>
    %67 = arith.mulf %66, %3 : vector<16x256xf32>
    %68 = arith.truncf %67 : vector<16x256xf32> to vector<16x256xbf16>
    %c0_33 = arith.constant 0 : index
    %c0_34 = arith.constant 0 : index
    %69 = vector.load %arg13[%c0_33, %c0_34] : memref<48x256xbf16, #tpu.memory_space<vmem>>, vector<16x256xbf16>
    tpu.vector_store %arg13[%c0_33, %c0_34], %68 {strides = array<i32>} : memref<48x256xbf16, #tpu.memory_space<vmem>>, vector<16x256xbf16>,
    %c17_i32_35 = arith.constant 17 : i32
    %70 = tpu.dynamic_rotate %67 by %c17_i32_35 dim 1 : vector<16x256xf32>, i32 -> vector<16x256xf32>
    %c0_36 = arith.constant 0 : index
    %c0_37 = arith.constant 0 : index
    %71 = vector.load %arg3[%c0_36, %c0_37] : memref<9x256xf32, #tpu.memory_space<vmem>>, vector<1x256xf32>
    %72 = vector.broadcast %71 : vector<1x256xf32> to vector<16x256xf32>
    %73 = arith.mulf %70, %72 : vector<16x256xf32>
    %74 = arith.truncf %73 : vector<16x256xf32> to vector<16x256xbf16>
    %c0_38 = arith.constant 0 : index
    %c0_39 = arith.constant 0 : index
    %75 = vector.load %arg12[%c0_38, %c0_39] : memref<144x256xbf16, #tpu.memory_space<vmem>>, vector<16x256xbf16>
    tpu.vector_store %arg12[%c0_38, %c0_39], %74 {strides = array<i32>} : memref<144x256xbf16, #tpu.memory_space<vmem>>, vector<16x256xbf16>,
    %c16_i32_40 = arith.constant 16 : i32
    %76 = tpu.dynamic_rotate %67 by %c16_i32_40 dim 1 : vector<16x256xf32>, i32 -> vector<16x256xf32>
    %c1_41 = arith.constant 1 : index
    %c0_42 = arith.constant 0 : index
    %77 = vector.load %arg3[%c1_41, %c0_42] : memref<9x256xf32, #tpu.memory_space<vmem>>, vector<1x256xf32>
    %78 = vector.broadcast %77 : vector<1x256xf32> to vector<16x256xf32>
    %79 = arith.mulf %76, %78 : vector<16x256xf32>
    %80 = arith.truncf %79 : vector<16x256xf32> to vector<16x256xbf16>
    %c16_43 = arith.constant 16 : index
    %c0_44 = arith.constant 0 : index
    %81 = vector.load %arg12[%c16_43, %c0_44] : memref<144x256xbf16, #tpu.memory_space<vmem>>, vector<16x256xbf16>
    tpu.vector_store %arg12[%c16_43, %c0_44], %80 {strides = array<i32>} : memref<144x256xbf16, #tpu.memory_space<vmem>>, vector<16x256xbf16>,
    %c15_i32_45 = arith.constant 15 : i32
    %82 = tpu.dynamic_rotate %67 by %c15_i32_45 dim 1 : vector<16x256xf32>, i32 -> vector<16x256xf32>
    %c2_46 = arith.constant 2 : index
    %c0_47 = arith.constant 0 : index
    %83 = vector.load %arg3[%c2_46, %c0_47] : memref<9x256xf32, #tpu.memory_space<vmem>>, vector<1x256xf32>
    %84 = vector.broadcast %83 : vector<1x256xf32> to vector<16x256xf32>
    %85 = arith.mulf %82, %84 : vector<16x256xf32>
    %86 = arith.truncf %85 : vector<16x256xf32> to vector<16x256xbf16>
    %c32_48 = arith.constant 32 : index
    %c0_49 = arith.constant 0 : index
    %87 = vector.load %arg12[%c32_48, %c0_49] : memref<144x256xbf16, #tpu.memory_space<vmem>>, vector<16x256xbf16>
    tpu.vector_store %arg12[%c32_48, %c0_49], %86 {strides = array<i32>} : memref<144x256xbf16, #tpu.memory_space<vmem>>, vector<16x256xbf16>,
    %c1_i32_50 = arith.constant 1 : i32
    %88 = tpu.dynamic_rotate %67 by %c1_i32_50 dim 1 : vector<16x256xf32>, i32 -> vector<16x256xf32>
    %c3_51 = arith.constant 3 : index
    %c0_52 = arith.constant 0 : index
    %89 = vector.load %arg3[%c3_51, %c0_52] : memref<9x256xf32, #tpu.memory_space<vmem>>, vector<1x256xf32>
    %90 = vector.broadcast %89 : vector<1x256xf32> to vector<16x256xf32>
    %91 = arith.mulf %88, %90 : vector<16x256xf32>
    %92 = arith.truncf %91 : vector<16x256xf32> to vector<16x256xbf16>
    %c48_53 = arith.constant 48 : index
    %c0_54 = arith.constant 0 : index
    %93 = vector.load %arg12[%c48_53, %c0_54] : memref<144x256xbf16, #tpu.memory_space<vmem>>, vector<16x256xbf16>
    tpu.vector_store %arg12[%c48_53, %c0_54], %92 {strides = array<i32>} : memref<144x256xbf16, #tpu.memory_space<vmem>>, vector<16x256xbf16>,
    %94 = arith.truncf %67 : vector<16x256xf32> to vector<16x256xbf16>
    %c64_55 = arith.constant 64 : index
    %c0_56 = arith.constant 0 : index
    %95 = vector.load %arg12[%c64_55, %c0_56] : memref<144x256xbf16, #tpu.memory_space<vmem>>, vector<16x256xbf16>
    tpu.vector_store %arg12[%c64_55, %c0_56], %94 {strides = array<i32>} : memref<144x256xbf16, #tpu.memory_space<vmem>>, vector<16x256xbf16>,
    %c255_i32_57 = arith.constant 255 : i32
    %96 = tpu.dynamic_rotate %67 by %c255_i32_57 dim 1 : vector<16x256xf32>, i32 -> vector<16x256xf32>
    %c5_58 = arith.constant 5 : index
    %c0_59 = arith.constant 0 : index
    %97 = vector.load %arg3[%c5_58, %c0_59] : memref<9x256xf32, #tpu.memory_space<vmem>>, vector<1x256xf32>
    %98 = vector.broadcast %97 : vector<1x256xf32> to vector<16x256xf32>
    %99 = arith.mulf %96, %98 : vector<16x256xf32>
    %100 = arith.truncf %99 : vector<16x256xf32> to vector<16x256xbf16>
    %c80_60 = arith.constant 80 : index
    %c0_61 = arith.constant 0 : index
    %101 = vector.load %arg12[%c80_60, %c0_61] : memref<144x256xbf16, #tpu.memory_space<vmem>>, vector<16x256xbf16>
    tpu.vector_store %arg12[%c80_60, %c0_61], %100 {strides = array<i32>} : memref<144x256xbf16, #tpu.memory_space<vmem>>, vector<16x256xbf16>,
    %c241_i32_62 = arith.constant 241 : i32
    %102 = tpu.dynamic_rotate %67 by %c241_i32_62 dim 1 : vector<16x256xf32>, i32 -> vector<16x256xf32>
    %c6_63 = arith.constant 6 : index
    %c0_64 = arith.constant 0 : index
    %103 = vector.load %arg3[%c6_63, %c0_64] : memref<9x256xf32, #tpu.memory_space<vmem>>, vector<1x256xf32>
    %104 = vector.broadcast %103 : vector<1x256xf32> to vector<16x256xf32>
    %105 = arith.mulf %102, %104 : vector<16x256xf32>
    %106 = arith.truncf %105 : vector<16x256xf32> to vector<16x256xbf16>
    %c96_65 = arith.constant 96 : index
    %c0_66 = arith.constant 0 : index
    %107 = vector.load %arg12[%c96_65, %c0_66] : memref<144x256xbf16, #tpu.memory_space<vmem>>, vector<16x256xbf16>
    tpu.vector_store %arg12[%c96_65, %c0_66], %106 {strides = array<i32>} : memref<144x256xbf16, #tpu.memory_space<vmem>>, vector<16x256xbf16>,
    %c240_i32_67 = arith.constant 240 : i32
    %108 = tpu.dynamic_rotate %67 by %c240_i32_67 dim 1 : vector<16x256xf32>, i32 -> vector<16x256xf32>
    %c7_68 = arith.constant 7 : index
    %c0_69 = arith.constant 0 : index
    %109 = vector.load %arg3[%c7_68, %c0_69] : memref<9x256xf32, #tpu.memory_space<vmem>>, vector<1x256xf32>
    %110 = vector.broadcast %109 : vector<1x256xf32> to vector<16x256xf32>
    %111 = arith.mulf %108, %110 : vector<16x256xf32>
    %112 = arith.truncf %111 : vector<16x256xf32> to vector<16x256xbf16>
    %c112_70 = arith.constant 112 : index
    %c0_71 = arith.constant 0 : index
    %113 = vector.load %arg12[%c112_70, %c0_71] : memref<144x256xbf16, #tpu.memory_space<vmem>>, vector<16x256xbf16>
    tpu.vector_store %arg12[%c112_70, %c0_71], %112 {strides = array<i32>} : memref<144x256xbf16, #tpu.memory_space<vmem>>, vector<16x256xbf16>,
    %c239_i32_72 = arith.constant 239 : i32
    %114 = tpu.dynamic_rotate %67 by %c239_i32_72 dim 1 : vector<16x256xf32>, i32 -> vector<16x256xf32>
    %c8_73 = arith.constant 8 : index
    %c0_74 = arith.constant 0 : index
    %115 = vector.load %arg3[%c8_73, %c0_74] : memref<9x256xf32, #tpu.memory_space<vmem>>, vector<1x256xf32>
    %116 = vector.broadcast %115 : vector<1x256xf32> to vector<16x256xf32>
    %117 = arith.mulf %114, %116 : vector<16x256xf32>
    %118 = arith.truncf %117 : vector<16x256xf32> to vector<16x256xbf16>
    %c128_75 = arith.constant 128 : index
    %c0_76 = arith.constant 0 : index
    %119 = vector.load %arg12[%c128_75, %c0_76] : memref<144x256xbf16, #tpu.memory_space<vmem>>, vector<16x256xbf16>
    tpu.vector_store %arg12[%c128_75, %c0_76], %118 {strides = array<i32>} : memref<144x256xbf16, #tpu.memory_space<vmem>>, vector<16x256xbf16>,
    %c1_77 = arith.constant 1 : index
    %c0_78 = arith.constant 0 : index
    %c0_79 = arith.constant 0 : index
    %120 = vector.load %arg4[%c1_77, %c0_78, %c0_79] : memref<3x16x144xbf16, #tpu.memory_space<vmem>>, vector<1x16x144xbf16>
    %121 = vector.shape_cast %120 : vector<1x16x144xbf16> to vector<16x144xbf16>
    %c0_80 = arith.constant 0 : index
    %c0_81 = arith.constant 0 : index
    %122 = vector.load %arg12[%c0_80, %c0_81] : memref<144x256xbf16, #tpu.memory_space<vmem>>, vector<144x256xbf16>
    %cst_82 = arith.constant dense<0.000000e+00> : vector<16x256xf32>
    %123 = tpu.matmul %121, %122, %cst_82 {dimension_numbers = #tpu.dot_dimension_numbers<[1], [0], [0], [1], [0, 0, 1, 1], [], []>} : vector<16x144xbf16>, vector<144x256xbf16>, vector<16x256xf32> -> vector<16x256xf32>
    %c1_83 = arith.constant 1 : index
    %c0_84 = arith.constant 0 : index
    %c0_85 = arith.constant 0 : index
    %124 = vector.load %arg5[%c1_83, %c0_84, %c0_85] : memref<3x16x1xf32, #tpu.memory_space<vmem>>, vector<1x16x1xf32>
    %125 = vector.shape_cast %124 : vector<1x16x1xf32> to vector<16x1xf32>
    %126 = arith.mulf %123, %3 : vector<16x256xf32>
    %cst_86 = arith.constant 0.000000e+00 : f32
    %127 = vector.broadcast %cst_86 : f32 to vector<16x256xf32>
    %128 = arith.cmpf oge, %126, %127 : vector<16x256xf32>
    %129 = vector.broadcast %125 : vector<16x1xf32> to vector<16x256xf32>
    %130 = arith.mulf %129, %126 : vector<16x256xf32>
    %131 = arith.select %128, %126, %130 : vector<16x256xi1>, vector<16x256xf32>
    %132 = arith.truncf %131 : vector<16x256xf32> to vector<16x256xbf16>
    %c16_87 = arith.constant 16 : index
    %c0_88 = arith.constant 0 : index
    %133 = vector.load %arg13[%c16_87, %c0_88] : memref<48x256xbf16, #tpu.memory_space<vmem>>, vector<16x256xbf16>
    tpu.vector_store %arg13[%c16_87, %c0_88], %132 {strides = array<i32>} : memref<48x256xbf16, #tpu.memory_space<vmem>>, vector<16x256xbf16>,
    %c17_i32_89 = arith.constant 17 : i32
    %134 = tpu.dynamic_rotate %131 by %c17_i32_89 dim 1 : vector<16x256xf32>, i32 -> vector<16x256xf32>
    %c0_90 = arith.constant 0 : index
    %c0_91 = arith.constant 0 : index
    %135 = vector.load %arg3[%c0_90, %c0_91] : memref<9x256xf32, #tpu.memory_space<vmem>>, vector<1x256xf32>
    %136 = vector.broadcast %135 : vector<1x256xf32> to vector<16x256xf32>
    %137 = arith.mulf %134, %136 : vector<16x256xf32>
    %138 = arith.truncf %137 : vector<16x256xf32> to vector<16x256xbf16>
    %c0_92 = arith.constant 0 : index
    %c0_93 = arith.constant 0 : index
    %139 = vector.load %arg12[%c0_92, %c0_93] : memref<144x256xbf16, #tpu.memory_space<vmem>>, vector<16x256xbf16>
    tpu.vector_store %arg12[%c0_92, %c0_93], %138 {strides = array<i32>} : memref<144x256xbf16, #tpu.memory_space<vmem>>, vector<16x256xbf16>,
    %c16_i32_94 = arith.constant 16 : i32
    %140 = tpu.dynamic_rotate %131 by %c16_i32_94 dim 1 : vector<16x256xf32>, i32 -> vector<16x256xf32>
    %c1_95 = arith.constant 1 : index
    %c0_96 = arith.constant 0 : index
    %141 = vector.load %arg3[%c1_95, %c0_96] : memref<9x256xf32, #tpu.memory_space<vmem>>, vector<1x256xf32>
    %142 = vector.broadcast %141 : vector<1x256xf32> to vector<16x256xf32>
    %143 = arith.mulf %140, %142 : vector<16x256xf32>
    %144 = arith.truncf %143 : vector<16x256xf32> to vector<16x256xbf16>
    %c16_97 = arith.constant 16 : index
    %c0_98 = arith.constant 0 : index
    %145 = vector.load %arg12[%c16_97, %c0_98] : memref<144x256xbf16, #tpu.memory_space<vmem>>, vector<16x256xbf16>
    tpu.vector_store %arg12[%c16_97, %c0_98], %144 {strides = array<i32>} : memref<144x256xbf16, #tpu.memory_space<vmem>>, vector<16x256xbf16>,
    %c15_i32_99 = arith.constant 15 : i32
    %146 = tpu.dynamic_rotate %131 by %c15_i32_99 dim 1 : vector<16x256xf32>, i32 -> vector<16x256xf32>
    %c2_100 = arith.constant 2 : index
    %c0_101 = arith.constant 0 : index
    %147 = vector.load %arg3[%c2_100, %c0_101] : memref<9x256xf32, #tpu.memory_space<vmem>>, vector<1x256xf32>
    %148 = vector.broadcast %147 : vector<1x256xf32> to vector<16x256xf32>
    %149 = arith.mulf %146, %148 : vector<16x256xf32>
    %150 = arith.truncf %149 : vector<16x256xf32> to vector<16x256xbf16>
    %c32_102 = arith.constant 32 : index
    %c0_103 = arith.constant 0 : index
    %151 = vector.load %arg12[%c32_102, %c0_103] : memref<144x256xbf16, #tpu.memory_space<vmem>>, vector<16x256xbf16>
    tpu.vector_store %arg12[%c32_102, %c0_103], %150 {strides = array<i32>} : memref<144x256xbf16, #tpu.memory_space<vmem>>, vector<16x256xbf16>,
    %c1_i32_104 = arith.constant 1 : i32
    %152 = tpu.dynamic_rotate %131 by %c1_i32_104 dim 1 : vector<16x256xf32>, i32 -> vector<16x256xf32>
    %c3_105 = arith.constant 3 : index
    %c0_106 = arith.constant 0 : index
    %153 = vector.load %arg3[%c3_105, %c0_106] : memref<9x256xf32, #tpu.memory_space<vmem>>, vector<1x256xf32>
    %154 = vector.broadcast %153 : vector<1x256xf32> to vector<16x256xf32>
    %155 = arith.mulf %152, %154 : vector<16x256xf32>
    %156 = arith.truncf %155 : vector<16x256xf32> to vector<16x256xbf16>
    %c48_107 = arith.constant 48 : index
    %c0_108 = arith.constant 0 : index
    %157 = vector.load %arg12[%c48_107, %c0_108] : memref<144x256xbf16, #tpu.memory_space<vmem>>, vector<16x256xbf16>
    tpu.vector_store %arg12[%c48_107, %c0_108], %156 {strides = array<i32>} : memref<144x256xbf16, #tpu.memory_space<vmem>>, vector<16x256xbf16>,
    %158 = arith.truncf %131 : vector<16x256xf32> to vector<16x256xbf16>
    %c64_109 = arith.constant 64 : index
    %c0_110 = arith.constant 0 : index
    %159 = vector.load %arg12[%c64_109, %c0_110] : memref<144x256xbf16, #tpu.memory_space<vmem>>, vector<16x256xbf16>
    tpu.vector_store %arg12[%c64_109, %c0_110], %158 {strides = array<i32>} : memref<144x256xbf16, #tpu.memory_space<vmem>>, vector<16x256xbf16>,
    %c255_i32_111 = arith.constant 255 : i32
    %160 = tpu.dynamic_rotate %131 by %c255_i32_111 dim 1 : vector<16x256xf32>, i32 -> vector<16x256xf32>
    %c5_112 = arith.constant 5 : index
    %c0_113 = arith.constant 0 : index
    %161 = vector.load %arg3[%c5_112, %c0_113] : memref<9x256xf32, #tpu.memory_space<vmem>>, vector<1x256xf32>
    %162 = vector.broadcast %161 : vector<1x256xf32> to vector<16x256xf32>
    %163 = arith.mulf %160, %162 : vector<16x256xf32>
    %164 = arith.truncf %163 : vector<16x256xf32> to vector<16x256xbf16>
    %c80_114 = arith.constant 80 : index
    %c0_115 = arith.constant 0 : index
    %165 = vector.load %arg12[%c80_114, %c0_115] : memref<144x256xbf16, #tpu.memory_space<vmem>>, vector<16x256xbf16>
    tpu.vector_store %arg12[%c80_114, %c0_115], %164 {strides = array<i32>} : memref<144x256xbf16, #tpu.memory_space<vmem>>, vector<16x256xbf16>,
    %c241_i32_116 = arith.constant 241 : i32
    %166 = tpu.dynamic_rotate %131 by %c241_i32_116 dim 1 : vector<16x256xf32>, i32 -> vector<16x256xf32>
    %c6_117 = arith.constant 6 : index
    %c0_118 = arith.constant 0 : index
    %167 = vector.load %arg3[%c6_117, %c0_118] : memref<9x256xf32, #tpu.memory_space<vmem>>, vector<1x256xf32>
    %168 = vector.broadcast %167 : vector<1x256xf32> to vector<16x256xf32>
    %169 = arith.mulf %166, %168 : vector<16x256xf32>
    %170 = arith.truncf %169 : vector<16x256xf32> to vector<16x256xbf16>
    %c96_119 = arith.constant 96 : index
    %c0_120 = arith.constant 0 : index
    %171 = vector.load %arg12[%c96_119, %c0_120] : memref<144x256xbf16, #tpu.memory_space<vmem>>, vector<16x256xbf16>
    tpu.vector_store %arg12[%c96_119, %c0_120], %170 {strides = array<i32>} : memref<144x256xbf16, #tpu.memory_space<vmem>>, vector<16x256xbf16>,
    %c240_i32_121 = arith.constant 240 : i32
    %172 = tpu.dynamic_rotate %131 by %c240_i32_121 dim 1 : vector<16x256xf32>, i32 -> vector<16x256xf32>
    %c7_122 = arith.constant 7 : index
    %c0_123 = arith.constant 0 : index
    %173 = vector.load %arg3[%c7_122, %c0_123] : memref<9x256xf32, #tpu.memory_space<vmem>>, vector<1x256xf32>
    %174 = vector.broadcast %173 : vector<1x256xf32> to vector<16x256xf32>
    %175 = arith.mulf %172, %174 : vector<16x256xf32>
    %176 = arith.truncf %175 : vector<16x256xf32> to vector<16x256xbf16>
    %c112_124 = arith.constant 112 : index
    %c0_125 = arith.constant 0 : index
    %177 = vector.load %arg12[%c112_124, %c0_125] : memref<144x256xbf16, #tpu.memory_space<vmem>>, vector<16x256xbf16>
    tpu.vector_store %arg12[%c112_124, %c0_125], %176 {strides = array<i32>} : memref<144x256xbf16, #tpu.memory_space<vmem>>, vector<16x256xbf16>,
    %c239_i32_126 = arith.constant 239 : i32
    %178 = tpu.dynamic_rotate %131 by %c239_i32_126 dim 1 : vector<16x256xf32>, i32 -> vector<16x256xf32>
    %c8_127 = arith.constant 8 : index
    %c0_128 = arith.constant 0 : index
    %179 = vector.load %arg3[%c8_127, %c0_128] : memref<9x256xf32, #tpu.memory_space<vmem>>, vector<1x256xf32>
    %180 = vector.broadcast %179 : vector<1x256xf32> to vector<16x256xf32>
    %181 = arith.mulf %178, %180 : vector<16x256xf32>
    %182 = arith.truncf %181 : vector<16x256xf32> to vector<16x256xbf16>
    %c128_129 = arith.constant 128 : index
    %c0_130 = arith.constant 0 : index
    %183 = vector.load %arg12[%c128_129, %c0_130] : memref<144x256xbf16, #tpu.memory_space<vmem>>, vector<16x256xbf16>
    tpu.vector_store %arg12[%c128_129, %c0_130], %182 {strides = array<i32>} : memref<144x256xbf16, #tpu.memory_space<vmem>>, vector<16x256xbf16>,
    %c2_131 = arith.constant 2 : index
    %c0_132 = arith.constant 0 : index
    %c0_133 = arith.constant 0 : index
    %184 = vector.load %arg4[%c2_131, %c0_132, %c0_133] : memref<3x16x144xbf16, #tpu.memory_space<vmem>>, vector<1x16x144xbf16>
    %185 = vector.shape_cast %184 : vector<1x16x144xbf16> to vector<16x144xbf16>
    %c0_134 = arith.constant 0 : index
    %c0_135 = arith.constant 0 : index
    %186 = vector.load %arg12[%c0_134, %c0_135] : memref<144x256xbf16, #tpu.memory_space<vmem>>, vector<144x256xbf16>
    %cst_136 = arith.constant dense<0.000000e+00> : vector<16x256xf32>
    %187 = tpu.matmul %185, %186, %cst_136 {dimension_numbers = #tpu.dot_dimension_numbers<[1], [0], [0], [1], [0, 0, 1, 1], [], []>} : vector<16x144xbf16>, vector<144x256xbf16>, vector<16x256xf32> -> vector<16x256xf32>
    %c2_137 = arith.constant 2 : index
    %c0_138 = arith.constant 0 : index
    %c0_139 = arith.constant 0 : index
    %188 = vector.load %arg5[%c2_137, %c0_138, %c0_139] : memref<3x16x1xf32, #tpu.memory_space<vmem>>, vector<1x16x1xf32>
    %189 = vector.shape_cast %188 : vector<1x16x1xf32> to vector<16x1xf32>
    %190 = arith.mulf %187, %3 : vector<16x256xf32>
    %cst_140 = arith.constant 0.000000e+00 : f32
    %191 = vector.broadcast %cst_140 : f32 to vector<16x256xf32>
    %192 = arith.cmpf oge, %190, %191 : vector<16x256xf32>
    %193 = vector.broadcast %189 : vector<16x1xf32> to vector<16x256xf32>
    %194 = arith.mulf %193, %190 : vector<16x256xf32>
    %195 = arith.select %192, %190, %194 : vector<16x256xi1>, vector<16x256xf32>
    %196 = arith.truncf %195 : vector<16x256xf32> to vector<16x256xbf16>
    %c32_141 = arith.constant 32 : index
    %c0_142 = arith.constant 0 : index
    %197 = vector.load %arg13[%c32_141, %c0_142] : memref<48x256xbf16, #tpu.memory_space<vmem>>, vector<16x256xbf16>
    tpu.vector_store %arg13[%c32_141, %c0_142], %196 {strides = array<i32>} : memref<48x256xbf16, #tpu.memory_space<vmem>>, vector<16x256xbf16>,
    %c0_143 = arith.constant 0 : index
    %c0_144 = arith.constant 0 : index
    %198 = vector.load %arg6[%c0_143, %c0_144] : memref<12x48xbf16, #tpu.memory_space<vmem>>, vector<12x48xbf16>
    %c0_145 = arith.constant 0 : index
    %c0_146 = arith.constant 0 : index
    %199 = vector.load %arg13[%c0_145, %c0_146] : memref<48x256xbf16, #tpu.memory_space<vmem>>, vector<48x256xbf16>
    %cst_147 = arith.constant dense<0.000000e+00> : vector<12x256xf32>
    %200 = tpu.matmul %198, %199, %cst_147 {dimension_numbers = #tpu.dot_dimension_numbers<[1], [0], [0], [1], [0, 0, 1, 1], [], []>} : vector<12x48xbf16>, vector<48x256xbf16>, vector<12x256xf32> -> vector<12x256xf32>
    %c0_148 = arith.constant 0 : index
    %c0_149 = arith.constant 0 : index
    %201 = vector.load %arg7[%c0_148, %c0_149] : memref<12x1xf32, #tpu.memory_space<vmem>>, vector<12x1xf32>
    %202 = vector.broadcast %201 : vector<12x1xf32> to vector<12x256xf32>
    %203 = arith.addf %200, %202 : vector<12x256xf32>
    %c0_150 = arith.constant 0 : index
    %c0_151 = arith.constant 0 : index
    %c0_152 = arith.constant 0 : index
    %204 = vector.load %arg10[%c0_150, %c0_151, %c0_152] : memref<1x12x256xf32, #tpu.memory_space<vmem>>, vector<1x12x256xf32>
    %205 = vector.shape_cast %204 : vector<1x12x256xf32> to vector<12x256xf32>
    %206 = vector.shape_cast %203 : vector<12x256xf32> to vector<1x12x256xf32>
    tpu.vector_store %arg10[%c0_150, %c0_151, %c0_152], %206 {strides = array<i32>} : memref<1x12x256xf32, #tpu.memory_space<vmem>>, vector<1x12x256xf32>,
    %207 = vector.extract_strided_slice %203 {offsets = [4, 0], sizes = [8, 256], strides = [1, 1]} : vector<12x256xf32> to vector<8x256xf32>
    %c17_i32_153 = arith.constant 17 : i32
    %208 = tpu.dynamic_rotate %207 by %c17_i32_153 dim 1 : vector<8x256xf32>, i32 -> vector<8x256xf32>
    %c0_154 = arith.constant 0 : index
    %c0_155 = arith.constant 0 : index
    %209 = vector.load %arg3[%c0_154, %c0_155] : memref<9x256xf32, #tpu.memory_space<vmem>>, vector<1x256xf32>
    %210 = vector.broadcast %209 : vector<1x256xf32> to vector<8x256xf32>
    %211 = arith.mulf %208, %210 : vector<8x256xf32>
    %212 = arith.truncf %211 : vector<8x256xf32> to vector<8x256xbf16>
    %c0_156 = arith.constant 0 : index
    %c0_157 = arith.constant 0 : index
    %213 = vector.load %arg12[%c0_156, %c0_157] : memref<144x256xbf16, #tpu.memory_space<vmem>>, vector<8x256xbf16>
    tpu.vector_store %arg12[%c0_156, %c0_157], %212 {strides = array<i32>} : memref<144x256xbf16, #tpu.memory_space<vmem>>, vector<8x256xbf16>,
    %c16_i32_158 = arith.constant 16 : i32
    %214 = tpu.dynamic_rotate %207 by %c16_i32_158 dim 1 : vector<8x256xf32>, i32 -> vector<8x256xf32>
    %c1_159 = arith.constant 1 : index
    %c0_160 = arith.constant 0 : index
    %215 = vector.load %arg3[%c1_159, %c0_160] : memref<9x256xf32, #tpu.memory_space<vmem>>, vector<1x256xf32>
    %216 = vector.broadcast %215 : vector<1x256xf32> to vector<8x256xf32>
    %217 = arith.mulf %214, %216 : vector<8x256xf32>
    %218 = arith.truncf %217 : vector<8x256xf32> to vector<8x256xbf16>
    %c8_161 = arith.constant 8 : index
    %c0_162 = arith.constant 0 : index
    %219 = vector.load %arg12[%c8_161, %c0_162] : memref<144x256xbf16, #tpu.memory_space<vmem>>, vector<8x256xbf16>
    tpu.vector_store %arg12[%c8_161, %c0_162], %218 {strides = array<i32>} : memref<144x256xbf16, #tpu.memory_space<vmem>>, vector<8x256xbf16>,
    %c15_i32_163 = arith.constant 15 : i32
    %220 = tpu.dynamic_rotate %207 by %c15_i32_163 dim 1 : vector<8x256xf32>, i32 -> vector<8x256xf32>
    %c2_164 = arith.constant 2 : index
    %c0_165 = arith.constant 0 : index
    %221 = vector.load %arg3[%c2_164, %c0_165] : memref<9x256xf32, #tpu.memory_space<vmem>>, vector<1x256xf32>
    %222 = vector.broadcast %221 : vector<1x256xf32> to vector<8x256xf32>
    %223 = arith.mulf %220, %222 : vector<8x256xf32>
    %224 = arith.truncf %223 : vector<8x256xf32> to vector<8x256xbf16>
    %c16_166 = arith.constant 16 : index
    %c0_167 = arith.constant 0 : index
    %225 = vector.load %arg12[%c16_166, %c0_167] : memref<144x256xbf16, #tpu.memory_space<vmem>>, vector<8x256xbf16>
    tpu.vector_store %arg12[%c16_166, %c0_167], %224 {strides = array<i32>} : memref<144x256xbf16, #tpu.memory_space<vmem>>, vector<8x256xbf16>,
    %c1_i32_168 = arith.constant 1 : i32
    %226 = tpu.dynamic_rotate %207 by %c1_i32_168 dim 1 : vector<8x256xf32>, i32 -> vector<8x256xf32>
    %c3_169 = arith.constant 3 : index
    %c0_170 = arith.constant 0 : index
    %227 = vector.load %arg3[%c3_169, %c0_170] : memref<9x256xf32, #tpu.memory_space<vmem>>, vector<1x256xf32>
    %228 = vector.broadcast %227 : vector<1x256xf32> to vector<8x256xf32>
    %229 = arith.mulf %226, %228 : vector<8x256xf32>
    %230 = arith.truncf %229 : vector<8x256xf32> to vector<8x256xbf16>
    %c24 = arith.constant 24 : index
    %c0_171 = arith.constant 0 : index
    %231 = vector.load %arg12[%c24, %c0_171] : memref<144x256xbf16, #tpu.memory_space<vmem>>, vector<8x256xbf16>
    tpu.vector_store %arg12[%c24, %c0_171], %230 {strides = array<i32>} : memref<144x256xbf16, #tpu.memory_space<vmem>>, vector<8x256xbf16>,
    %232 = arith.truncf %207 : vector<8x256xf32> to vector<8x256xbf16>
    %c32_172 = arith.constant 32 : index
    %c0_173 = arith.constant 0 : index
    %233 = vector.load %arg12[%c32_172, %c0_173] : memref<144x256xbf16, #tpu.memory_space<vmem>>, vector<8x256xbf16>
    tpu.vector_store %arg12[%c32_172, %c0_173], %232 {strides = array<i32>} : memref<144x256xbf16, #tpu.memory_space<vmem>>, vector<8x256xbf16>,
    %c255_i32_174 = arith.constant 255 : i32
    %234 = tpu.dynamic_rotate %207 by %c255_i32_174 dim 1 : vector<8x256xf32>, i32 -> vector<8x256xf32>
    %c5_175 = arith.constant 5 : index
    %c0_176 = arith.constant 0 : index
    %235 = vector.load %arg3[%c5_175, %c0_176] : memref<9x256xf32, #tpu.memory_space<vmem>>, vector<1x256xf32>
    %236 = vector.broadcast %235 : vector<1x256xf32> to vector<8x256xf32>
    %237 = arith.mulf %234, %236 : vector<8x256xf32>
    %238 = arith.truncf %237 : vector<8x256xf32> to vector<8x256xbf16>
    %c40 = arith.constant 40 : index
    %c0_177 = arith.constant 0 : index
    %239 = vector.load %arg12[%c40, %c0_177] : memref<144x256xbf16, #tpu.memory_space<vmem>>, vector<8x256xbf16>
    tpu.vector_store %arg12[%c40, %c0_177], %238 {strides = array<i32>} : memref<144x256xbf16, #tpu.memory_space<vmem>>, vector<8x256xbf16>,
    %c241_i32_178 = arith.constant 241 : i32
    %240 = tpu.dynamic_rotate %207 by %c241_i32_178 dim 1 : vector<8x256xf32>, i32 -> vector<8x256xf32>
    %c6_179 = arith.constant 6 : index
    %c0_180 = arith.constant 0 : index
    %241 = vector.load %arg3[%c6_179, %c0_180] : memref<9x256xf32, #tpu.memory_space<vmem>>, vector<1x256xf32>
    %242 = vector.broadcast %241 : vector<1x256xf32> to vector<8x256xf32>
    %243 = arith.mulf %240, %242 : vector<8x256xf32>
    %244 = arith.truncf %243 : vector<8x256xf32> to vector<8x256xbf16>
    %c48_181 = arith.constant 48 : index
    %c0_182 = arith.constant 0 : index
    %245 = vector.load %arg12[%c48_181, %c0_182] : memref<144x256xbf16, #tpu.memory_space<vmem>>, vector<8x256xbf16>
    tpu.vector_store %arg12[%c48_181, %c0_182], %244 {strides = array<i32>} : memref<144x256xbf16, #tpu.memory_space<vmem>>, vector<8x256xbf16>,
    %c240_i32_183 = arith.constant 240 : i32
    %246 = tpu.dynamic_rotate %207 by %c240_i32_183 dim 1 : vector<8x256xf32>, i32 -> vector<8x256xf32>
    %c7_184 = arith.constant 7 : index
    %c0_185 = arith.constant 0 : index
    %247 = vector.load %arg3[%c7_184, %c0_185] : memref<9x256xf32, #tpu.memory_space<vmem>>, vector<1x256xf32>
    %248 = vector.broadcast %247 : vector<1x256xf32> to vector<8x256xf32>
    %249 = arith.mulf %246, %248 : vector<8x256xf32>
    %250 = arith.truncf %249 : vector<8x256xf32> to vector<8x256xbf16>
    %c56 = arith.constant 56 : index
    %c0_186 = arith.constant 0 : index
    %251 = vector.load %arg12[%c56, %c0_186] : memref<144x256xbf16, #tpu.memory_space<vmem>>, vector<8x256xbf16>
    tpu.vector_store %arg12[%c56, %c0_186], %250 {strides = array<i32>} : memref<144x256xbf16, #tpu.memory_space<vmem>>, vector<8x256xbf16>,
    %c239_i32_187 = arith.constant 239 : i32
    %252 = tpu.dynamic_rotate %207 by %c239_i32_187 dim 1 : vector<8x256xf32>, i32 -> vector<8x256xf32>
    %c8_188 = arith.constant 8 : index
    %c0_189 = arith.constant 0 : index
    %253 = vector.load %arg3[%c8_188, %c0_189] : memref<9x256xf32, #tpu.memory_space<vmem>>, vector<1x256xf32>
    %254 = vector.broadcast %253 : vector<1x256xf32> to vector<8x256xf32>
    %255 = arith.mulf %252, %254 : vector<8x256xf32>
    %256 = arith.truncf %255 : vector<8x256xf32> to vector<8x256xbf16>
    %c64_190 = arith.constant 64 : index
    %c0_191 = arith.constant 0 : index
    %257 = vector.load %arg12[%c64_190, %c0_191] : memref<144x256xbf16, #tpu.memory_space<vmem>>, vector<8x256xbf16>
    tpu.vector_store %arg12[%c64_190, %c0_191], %256 {strides = array<i32>} : memref<144x256xbf16, #tpu.memory_space<vmem>>, vector<8x256xbf16>,
    %c0_192 = arith.constant 0 : index
    %c0_193 = arith.constant 0 : index
    %258 = vector.load %arg8[%c0_192, %c0_193] : memref<2x72xbf16, #tpu.memory_space<vmem>>, vector<2x72xbf16>
    %c0_194 = arith.constant 0 : index
    %c0_195 = arith.constant 0 : index
    %259 = vector.load %arg12[%c0_194, %c0_195] : memref<144x256xbf16, #tpu.memory_space<vmem>>, vector<72x256xbf16>
    %cst_196 = arith.constant dense<0.000000e+00> : vector<2x256xf32>
    %260 = tpu.matmul %258, %259, %cst_196 {dimension_numbers = #tpu.dot_dimension_numbers<[1], [0], [0], [1], [0, 0, 1, 1], [], []>} : vector<2x72xbf16>, vector<72x256xbf16>, vector<2x256xf32> -> vector<2x256xf32>
    %c0_197 = arith.constant 0 : index
    %c0_198 = arith.constant 0 : index
    %261 = vector.load %arg9[%c0_197, %c0_198] : memref<2x1xf32, #tpu.memory_space<vmem>>, vector<2x1xf32>
    %262 = vector.broadcast %261 : vector<2x1xf32> to vector<2x256xf32>
    %263 = arith.addf %260, %262 : vector<2x256xf32>
    %c0_199 = arith.constant 0 : index
    %c0_200 = arith.constant 0 : index
    %c0_201 = arith.constant 0 : index
    %264 = vector.load %arg11[%c0_199, %c0_200, %c0_201] : memref<1x2x256xf32, #tpu.memory_space<vmem>>, vector<1x2x256xf32>
    %265 = vector.shape_cast %264 : vector<1x2x256xf32> to vector<2x256xf32>
    %266 = vector.shape_cast %263 : vector<2x256xf32> to vector<1x2x256xf32>
    tpu.vector_store %arg11[%c0_199, %c0_200, %c0_201], %266 {strides = array<i32>} : memref<1x2x256xf32, #tpu.memory_space<vmem>>, vector<1x2x256xf32>,
    return
  }
  func.func @transform_0(%arg0: i32) -> (i32, i32, i32) {
    %c0_i32 = arith.constant 0 : i32
    %c0_i32_0 = arith.constant 0 : i32
    %c0_i32_1 = arith.constant 0 : i32
    return %arg0, %c0_i32, %c0_i32_0 : i32, i32, i32
  }
  func.func @transform_1(%arg0: i32) -> (i32, i32, i32) {
    %c0_i32 = arith.constant 0 : i32
    %c0_i32_0 = arith.constant 0 : i32
    %c0_i32_1 = arith.constant 0 : i32
    return %arg0, %c0_i32, %c0_i32_0 : i32, i32, i32
  }
  func.func @transform_2(%arg0: i32) -> (i32, i32) {
    %c0_i32 = arith.constant 0 : i32
    %c0_i32_0 = arith.constant 0 : i32
    %c0_i32_1 = arith.constant 0 : i32
    return %c0_i32, %c0_i32_0 : i32, i32
  }
  func.func @transform_3(%arg0: i32) -> (i32, i32, i32) {
    %c0_i32 = arith.constant 0 : i32
    %c0_i32_0 = arith.constant 0 : i32
    %c0_i32_1 = arith.constant 0 : i32
    %c0_i32_2 = arith.constant 0 : i32
    return %c0_i32, %c0_i32_0, %c0_i32_1 : i32, i32, i32
  }
  func.func @transform_4(%arg0: i32) -> (i32, i32, i32) {
    %c0_i32 = arith.constant 0 : i32
    %c0_i32_0 = arith.constant 0 : i32
    %c0_i32_1 = arith.constant 0 : i32
    %c0_i32_2 = arith.constant 0 : i32
    return %c0_i32, %c0_i32_0, %c0_i32_1 : i32, i32, i32
  }
  func.func @transform_5(%arg0: i32) -> (i32, i32) {
    %c0_i32 = arith.constant 0 : i32
    %c0_i32_0 = arith.constant 0 : i32
    %c0_i32_1 = arith.constant 0 : i32
    return %c0_i32, %c0_i32_0 : i32, i32
  }
  func.func @transform_6(%arg0: i32) -> (i32, i32) {
    %c0_i32 = arith.constant 0 : i32
    %c0_i32_0 = arith.constant 0 : i32
    %c0_i32_1 = arith.constant 0 : i32
    return %c0_i32, %c0_i32_0 : i32, i32
  }
  func.func @transform_7(%arg0: i32) -> (i32, i32) {
    %c0_i32 = arith.constant 0 : i32
    %c0_i32_0 = arith.constant 0 : i32
    %c0_i32_1 = arith.constant 0 : i32
    return %c0_i32, %c0_i32_0 : i32, i32
  }
  func.func @transform_8(%arg0: i32) -> (i32, i32) {
    %c0_i32 = arith.constant 0 : i32
    %c0_i32_0 = arith.constant 0 : i32
    %c0_i32_1 = arith.constant 0 : i32
    return %c0_i32, %c0_i32_0 : i32, i32
  }
  func.func @transform_9(%arg0: i32) -> (i32, i32, i32) {
    %c0_i32 = arith.constant 0 : i32
    %c0_i32_0 = arith.constant 0 : i32
    %c0_i32_1 = arith.constant 0 : i32
    return %arg0, %c0_i32, %c0_i32_0 : i32, i32, i32
  }
  func.func @transform_10(%arg0: i32) -> (i32, i32, i32) {
    %c0_i32 = arith.constant 0 : i32
    %c0_i32_0 = arith.constant 0 : i32
    %c0_i32_1 = arith.constant 0 : i32
    return %arg0, %c0_i32, %c0_i32_0 : i32, i32, i32
  }
}

</mosaic_0001>

<bundles_post_ra>
// kernel: forward.1
= control target key start
LH: loop header
LB: loop body
LE: loop exit
PB: predicated region body
PF: predicated region fallthrough
CT: control target
= control target key end

     0   :  { %s2189_s13 = smov 0   ;;  %s2947_s0 = inlined_call_operand.vmem [shape: f32[2,16,256], index: 0, kind: input, shape index: {}]   ;;  %s2948_s1 = inlined_call_operand.vmem [shape: f32[2,1,256], index: 1, kind: input, shape index: {}]   ;;  %s2949_s2 = inlined_call_operand.vmem [shape: f32[9,256], index: 2, kind: input, shape index: {}]   ;;  %s2950_s3 = inlined_call_operand.vmem [shape: bf16[3,16,144], index: 3, kind: input, shape index: {}]   ;;  %s2951_s4 = inlined_call_operand.vmem [shape: f32[3,16,1], index: 4, kind: input, shape index: {}]   ;;  %s2952_s5 = inlined_call_operand.vmem [shape: bf16[12,48], index: 5, kind: input, shape index: {}]   ;;  %s2953_s6 = inlined_call_operand.vmem [shape: f32[12,1], index: 6, kind: input, shape index: {}]   ;;  %s2954_s7 = inlined_call_operand.vmem [shape: bf16[2,72], index: 7, kind: input, shape index: {}]   ;;  %s2955_s8 = inlined_call_operand.vmem [shape: f32[2,1], index: 8, kind: input, shape index: {}]   ;;  %s2956_s9 = inlined_call_operand.vmem [shape: f32[2,12,256], index: 9, kind: output, shape index: {0}]   ;;  %s2957_s10 = inlined_call_operand.vmem [shape: f32[2,2,256], index: 10, kind: output, shape index: {1}]  }
   0x1 LB: > { %s2021_s14 = sadd.s32 4294967295, %s2123_s13   ;;  %p2025_p0 = scmp.ge.s32.totalorder %s2123_s13, 1  ;;  %s2123_s13 = sphi %s2189_s13, %s21_s13  }
   0x2   : > { %p324_p1 = scmp.lt.s32.totalorder %s2123_s13, 3 }
   0x4   : > { %p325_p2 = pnand %p2025_p0, %p324_p1 }
   0x5   : > { %p371_p3 = scmp.lt.s32.totalorder (!%p325_p2), %s2021_s14, 1  ;;  %s2125_s19 = smov (!%p325_p2), 17   ;;  %v2109_v6 = vld [vmem:[%s2950_s3 + $0x4] ss:$8 sps:$4 sm:$0xff] (!%p325_p2)   ;;  %vm713_vm0 = vcmask (!%p325_p2), 130048   ;;  %v2133_v7 = vmov (!%p325_p2), 0   ;;  %v393_v10 = vlaneseq (!%p325_p2) }
   0x6   : > { %328 = sbr.rel (%p325_p2) target bundleno = 1831 (0x727), region = 56  ;;  %s2126_s20 = smov (!%p325_p2), 16   ;;  %2042 = vmatprep.mubr.msk.bf16.mxu0 (!%p325_p2), %vm713_vm0, %v2109_v6  ;;  %2105 = vset.pattern.permute.xlu0 (!%p325_p2), %v2133_v7  ;;  %v760_v8 = vld [vmem:[%s2951_s4] sm:$0xff] (!%p325_p2)  ;;  %v761_v9 = vld [vmem:[%s2951_s4 + $0x8] sm:$0xff] (!%p325_p2) }
   0x7   : > { %s2127_s21 = smov (!%p325_p2), 15   ;;  %s2128_s22 = smov (!%p325_p2), 1   ;;  %2106 = vset.pattern.permute.xlu1 (!%p325_p2), %v2133_v7  ;;  %v394_v11 = vshrl.u32 (!%p325_p2), %v393_v10, 7  ;;  %v2293_v12 = vand.u32 (!%p325_p2), 127, %v393_v10 }
   0x8   : > { %s2129_s23 = smov (!%p325_p2), 127   ;;  %s2130_s24 = smov (!%p325_p2), 113   ;;  %v422_v15 = vld [vmem:[%s2949_s2] ss:$8 sm:$0x3] (!%p325_p2) }
   0x9   : > { %s2131_s25 = smov (!%p325_p2), 112   ;;  %s2132_s28 = smov (!%p325_p2), 111   ;;  %v2295_v13 = vsub.s32 (!%p325_p2), 0, %v394_v11  ;;  %v2297_v14 = vsub.s32 (!%p325_p2), 1, %v394_v11  ;;  %vm417_vm1 = vcmp.lt.s32.totalorder (!%p325_p2), %v2293_v12, 17  ;;  %vm450_vm2 = vcmp.lt.s32.totalorder (!%p325_p2), %v2293_v12, 16 }
   0xa   : > { %v2033_v30 = vld [vmem:[%s2949_s2 + $0x1] ss:$8 sm:$0x3] (!%p325_p2)  ;;  %v2034_v47 = vld [vmem:[%s2949_s2 + $0x2] ss:$8 sm:$0x3] (!%p325_p2) }
   0xb   : > { %v427_v18 = vrot.slane (!%p325_p2), %v422_v15, %v2295_v13  ;;  %v431_v19 = vrot.slane (!%p325_p2), %v422_v15, %v2297_v14  ;;  %v461_v35 = vrot.slane (!%p325_p2), %v2033_v30, %v2295_v13  ;;  %v465_v36 = vrot.slane (!%p325_p2), %v2033_v30, %v2297_v14  ;;  %v2035_v6 = vld [vmem:[%s2949_s2 + $0x3] ss:$8 sm:$0x3] (!%p325_p2) }
   0xc   : > { %vm484_vm3 = vcmp.lt.s32.totalorder (!%p325_p2), %v2293_v12, 15  ;;  %v495_v52 = vrot.slane (!%p325_p2), %v2034_v47, %v2295_v13  ;;  %v499_v53 = vrot.slane (!%p325_p2), %v2034_v47, %v2297_v14  ;;  %vm518_vm4 = vcmp.lt.s32.totalorder (!%p325_p2), %v2293_v12, 1 }
   0xd   : > { %s2959_s14 = smov (!%p371_p3, %s2021_s14), 1  ;;  %v529_v15 = vrot.slane %v2035_v6, %v2295_v13  ;;  %vm556_vm5 = vcmp.lt.s32.totalorder %v2293_v12, 127  ;;  %vm590_vm6 = vcmp.lt.s32.totalorder %v2293_v12, 113  ;;  %vm624_vm7 = vcmp.lt.s32.totalorder %v2293_v12, 112 }
   0xe   : > { %s2085_s15 = sshll.u32 %s2959_s14, 5  ;;  %vm658_vm8 = vcmp.lt.s32.totalorder %v2293_v12, 111  ;;  %s2028_s16 = sshll.u32 %s2959_s14, 1 }
   0xf   : > { %s375_s18 = scalar_lea.vmem %s2947_s0, %s2085_s15  ;;  %s379_s26 = scalar_lea.vmem %s2948_s1, %s2028_s16 }
  0x10   : > { %v2205_v0 = vld [vmem:[%s375_s18 + $0x8] sm:$0xff]  ;;  %v2207_v1 = vld [vmem:[%s375_s18] sm:$0xff]  ;;  %v2213_v2 = vld [vmem:[%s375_s18 + $0x18] sm:$0xff]  ;;  %s384_s30 = scalar_lea.vmem %s2956_s9, %s2085_s15 }
  0x11   : > { %411 = vrot.lane.b32.xlu1 %v2205_v0, %s2125_s19  ;;  %407 = vrot.lane.b32.xlu0 %v2207_v1, %s2125_s19  ;;  %v2215_v3 = vld [vmem:[%s375_s18 + $0x10] sm:$0xff]  ;;  %v545_v4 = vpack.c.bf16 %v2213_v2, %v2205_v0 }
  0x12   : > { %v544_v5 = vpack.c.bf16 %v2215_v3, %v2207_v1 }
  0x15   : > { %413 = vrot.lane.b32.xlu1 %v2213_v2, %s2125_s19  ;;  %409 = vrot.lane.b32.xlu0 %v2215_v3, %s2125_s19 }
  0x19   : > { %444 = vrot.lane.b32.xlu1 %v2215_v3, %s2126_s20  ;;  %442 = vrot.lane.b32.xlu0 %v2207_v1, %s2126_s20 }
  0x1d   : > { %448 = vrot.lane.b32.xlu1 %v2213_v2, %s2126_s20  ;;  %446 = vrot.lane.b32.xlu0 %v2205_v0, %s2126_s20 }
  0x21   : > { %478 = vrot.lane.b32.xlu1 %v2215_v3, %s2127_s21  ;;  %476 = vrot.lane.b32.xlu0 %v2207_v1, %s2127_s21 }
  0x25   : > { %482 = vrot.lane.b32.xlu1 %v2213_v2, %s2127_s21  ;;  %480 = vrot.lane.b32.xlu0 %v2205_v0, %s2127_s21 }
  0x29   : > { %512 = vrot.lane.b32.xlu1 %v2215_v3, %s2128_s22  ;;  %510 = vrot.lane.b32.xlu0 %v2207_v1, %s2128_s22 }
  0x2d   : > { %516 = vrot.lane.b32.xlu1 %v2213_v2, %s2128_s22  ;;  %514 = vrot.lane.b32.xlu0 %v2205_v0, %s2128_s22 }
  0x31   : > { %550 = vrot.lane.b32.xlu1 %v2215_v3, %s2129_s23  ;;  %548 = vrot.lane.b32.xlu0 %v2207_v1, %s2129_s23 }
  0x35   : > { %554 = vrot.lane.b32.xlu1 %v2213_v2, %s2129_s23  ;;  %552 = vrot.lane.b32.xlu0 %v2205_v0, %s2129_s23 }
  0x39   : > { %584 = vrot.lane.b32.xlu1 %v2215_v3, %s2130_s24  ;;  %582 = vrot.lane.b32.xlu0 %v2207_v1, %s2130_s24 }
  0x3d   : > { %588 = vrot.lane.b32.xlu1 %v2213_v2, %s2130_s24  ;;  %586 = vrot.lane.b32.xlu0 %v2205_v0, %s2130_s24 }
  0x41   : > { %618 = vrot.lane.b32.xlu1 %v2215_v3, %s2131_s25  ;;  %616 = vrot.lane.b32.xlu0 %v2207_v1, %s2131_s25 }
  0x45   : > { %622 = vrot.lane.b32.xlu1 %v2213_v2, %s2131_s25  ;;  %620 = vrot.lane.b32.xlu0 %v2205_v0, %s2131_s25 }
  0x49   : > { %652 = vrot.lane.b32.xlu1 %v2215_v3, %s2132_s28  ;;  %650 = vrot.lane.b32.xlu0 %v2207_v1, %s2132_s28 }
  0x4d   : > { %656 = vrot.lane.b32.xlu1 %v2213_v2, %s2132_s28  ;;  %654 = vrot.lane.b32.xlu0 %v2205_v0, %s2132_s28  ;;  %v2037_v0 = vld [vmem:[%s2949_s2 + $0x6] ss:$8 sm:$0x3] }
  0x4e   : > { %v605_v47 = vrot.slane %v2037_v0, %v2297_v14 }
  0x51   : > { %768 = vperm.xlu0 %2105, %v760_v8   ;;  %773 = vperm.xlu1 %2106, %v761_v9  }
  0x83   : > { %v412_v16 = vpop.permute.xlu1 %411  ;;  %v408_v17 = vpop.permute.xlu0 %407 }
  0x84   : > { %v418_v20 = vsel %vm417_vm1, %v408_v17, %v412_v16  ;;  %v420_v21 = vsel %vm417_vm1, %v412_v16, %v408_v17  ;;  %v533_v16 = vrot.slane %v2035_v6, %v2297_v14 }
  0x85   : > { %v434_v26 = vmul.f32 %v427_v18, %v420_v21  ;;  %v435_v27 = vmul.f32 %v431_v19, %v418_v20 }
  0x87   : > { %v414_v22 = vpop.permute.xlu1 %413  ;;  %v410_v23 = vpop.permute.xlu0 %409 }
  0x88   : > { %v419_v24 = vsel %vm417_vm1, %v410_v23, %v414_v22  ;;  %v421_v25 = vsel %vm417_vm1, %v414_v22, %v410_v23 }
  0x89   : > { %v436_v28 = vmul.f32 %v427_v18, %v421_v25  ;;  %v437_v29 = vmul.f32 %v431_v19, %v419_v24 }
  0x8b   : > { %v438_v31 = vpack.c.bf16 %v436_v28, %v434_v26  ;;  %v439_v32 = vpack.c.bf16 %v437_v29, %v435_v27  ;;  %v445_v33 = vpop.permute.xlu1 %444  ;;  %v443_v34 = vpop.permute.xlu0 %442  ;;  %v2036_v27 = vld [vmem:[%s2949_s2 + $0x5] ss:$8 sm:$0x3] }
  0x8d   : > { %717 = vmatprep.subr.bf16.mxu0 %v439_v32  ;;  %v567_v32 = vrot.slane %v2036_v27, %v2295_v13 }
  0x8e   : > { %718 = vmatpush1.bf16.msra.mxu0 %v438_v31 }
  0x8f   : > { %v449_v37 = vpop.permute.xlu1 %448  ;;  %v447_v38 = vpop.permute.xlu0 %446 }
  0x90   : > { %v452_v39 = vsel %vm450_vm2, %v445_v33, %v449_v37  ;;  %v454_v40 = vsel %vm450_vm2, %v449_v37, %v445_v33  ;;  %v451_v41 = vsel %vm450_vm2, %v443_v34, %v447_v38  ;;  %v453_v42 = vsel %vm450_vm2, %v447_v38, %v443_v34 }
  0x91   : > { %v470_v43 = vmul.f32 %v461_v35, %v454_v40  ;;  %v471_v44 = vmul.f32 %v465_v36, %v452_v39  ;;  %v468_v45 = vmul.f32 %v461_v35, %v453_v42  ;;  %v469_v46 = vmul.f32 %v465_v36, %v451_v41 }
  0x92   : > { %v571_v33 = vrot.slane %v2036_v27, %v2297_v14 }
  0x93   : > { %v472_v48 = vpack.c.bf16 %v470_v43, %v468_v45  ;;  %v473_v49 = vpack.c.bf16 %v471_v44, %v469_v46  ;;  %v479_v50 = vpop.permute.xlu1 %478  ;;  %v477_v51 = vpop.permute.xlu0 %476  ;;  %v601_v46 = vrot.slane %v2037_v0, %v2295_v13 }
  0x95   : > { %719 = vmatprep.subr.bf16.mxu0 %v473_v49 }
  0x96   : > { %720 = vmatpush1.bf16.msra.mxu0 %v472_v48 }
  0x97   : > { %v483_v54 = vpop.permute.xlu1 %482  ;;  %v481_v55 = vpop.permute.xlu0 %480 }
  0x98   : > { %v486_v56 = vsel %vm484_vm3, %v479_v50, %v483_v54  ;;  %v488_v57 = vsel %vm484_vm3, %v483_v54, %v479_v50  ;;  %v485_v58 = vsel %vm484_vm3, %v477_v51, %v481_v55  ;;  %v487_v59 = vsel %vm484_vm3, %v481_v55, %v477_v51  ;;  %v2038_v55 = vld [vmem:[%s2949_s2 + $0x7] ss:$8 sm:$0x3] }
  0x99   : > { %v504_v60 = vmul.f32 %v495_v52, %v488_v57  ;;  %v505_v61 = vmul.f32 %v499_v53, %v486_v56  ;;  %v502_v62 = vmul.f32 %v495_v52, %v487_v59  ;;  %v503_v63 = vmul.f32 %v499_v53, %v485_v58 }
  0x9b   : > { %v506_v8 = vpack.c.bf16 %v504_v60, %v502_v62  ;;  %v507_v9 = vpack.c.bf16 %v505_v61, %v503_v63  ;;  %v513_v10 = vpop.permute.xlu1 %512  ;;  %v511_v11 = vpop.permute.xlu0 %510  ;;  %v635_v60 = vrot.slane %v2038_v55, %v2295_v13  ;;  %v639_v61 = vrot.slane %v2038_v55, %v2297_v14  ;;  %v2112_v55 = vld [vmem:[%s2950_s3 + $0x14] ss:$8 sps:$4 sm:$0xff]  }
  0x9c   : > { %2054 = vmatprep.mubr.msk.bf16.mxu1 %vm713_vm0, %v2112_v55 }
  0x9d   : > { %721 = vmatprep.subr.bf16.mxu0 %v507_v9 }
  0x9e   : > { %722 = vmatpush1.bf16.msra.mxu0 %v506_v8 }
  0x9f   : > { %v517_v17 = vpop.permute.xlu1 %516  ;;  %v515_v18 = vpop.permute.xlu0 %514 }
  0xa0   : > { %v520_v19 = vsel %vm518_vm4, %v513_v10, %v517_v17  ;;  %v522_v20 = vsel %vm518_vm4, %v517_v17, %v513_v10  ;;  %v519_v21 = vsel %vm518_vm4, %v511_v11, %v515_v18  ;;  %v521_v22 = vsel %vm518_vm4, %v515_v18, %v511_v11  ;;  %v2039_v18 = vld [vmem:[%s2949_s2 + $0x10] ss:$8 sm:$0x3] }
  0xa1   : > { %v538_v23 = vmul.f32 %v529_v15, %v522_v20  ;;  %v539_v24 = vmul.f32 %v533_v16, %v520_v19  ;;  %v536_v25 = vmul.f32 %v529_v15, %v521_v22  ;;  %v537_v26 = vmul.f32 %v533_v16, %v519_v21 }
  0xa3   : > { %v540_v28 = vpack.c.bf16 %v538_v23, %v536_v25  ;;  %v541_v29 = vpack.c.bf16 %v539_v24, %v537_v26  ;;  %v551_v30 = vpop.permute.xlu1 %550  ;;  %v549_v31 = vpop.permute.xlu0 %548  ;;  %v669_v23 = vrot.slane %v2039_v18, %v2295_v13  ;;  %v673_v24 = vrot.slane %v2039_v18, %v2297_v14 }
  0xa5   : > { %723 = vmatprep.subr.bf16.mxu0 %v541_v29 }
  0xa6   : > { %724 = vmatpush1.bf16.msra.mxu0 %v540_v28 }
  0xa7   : > { %v555_v34 = vpop.permute.xlu1 %554  ;;  %v553_v35 = vpop.permute.xlu0 %552  ;;  %725 = vmatprep.subr.bf16.mxu0 %v545_v4 }
  0xa8   : > { %v558_v36 = vsel %vm556_vm5, %v551_v30, %v555_v34  ;;  %v560_v37 = vsel %vm556_vm5, %v555_v34, %v551_v30  ;;  %v557_v38 = vsel %vm556_vm5, %v549_v31, %v553_v35  ;;  %v559_v39 = vsel %vm556_vm5, %v553_v35, %v549_v31 }
  0xa9   : > { %v576_v40 = vmul.f32 %v567_v32, %v558_v36  ;;  %v577_v41 = vmul.f32 %v571_v33, %v560_v37  ;;  %v574_v42 = vmul.f32 %v567_v32, %v557_v38  ;;  %v575_v43 = vmul.f32 %v571_v33, %v559_v39  ;;  %v2107_v37 = vld [vmem:[%s2950_s3] ss:$8 sps:$4 sm:$0xff]  }
  0xaa   : > { %726 = vmatpush1.bf16.msra.mxu0 %v544_v5  ;;  %v391_v38 = vld [vmem:[%s379_s26] sm:$0x3] }
  0xab   : > { %v578_v2 = vpack.c.bf16 %v576_v40, %v574_v42  ;;  %v579_v4 = vpack.c.bf16 %v577_v41, %v575_v43  ;;  %v585_v44 = vpop.permute.xlu1 %584  ;;  %v583_v45 = vpop.permute.xlu0 %582  ;;  %v2425_v40 = vrot.slane %v391_v38, %v2295_v13 }
  0xad   : > { %727 = vmatprep.subr.bf16.mxu0 %v579_v4 }
  0xae   : > { %728 = vmatpush1.bf16.msra.mxu0 %v578_v2 }
  0xaf   : > { %v589_v48 = vpop.permute.xlu1 %588  ;;  %v587_v49 = vpop.permute.xlu0 %586 }
  0xb0   : > { %v592_v50 = vsel %vm590_vm6, %v585_v44, %v589_v48  ;;  %v594_v1 = vsel %vm590_vm6, %v589_v48, %v585_v44  ;;  %v591_v3 = vsel %vm590_vm6, %v583_v45, %v587_v49  ;;  %v593_v5 = vsel %vm590_vm6, %v587_v49, %v583_v45 }
  0xb1   : > { %v610_v51 = vmul.f32 %v601_v46, %v592_v50  ;;  %v611_v52 = vmul.f32 %v605_v47, %v594_v1  ;;  %v608_v53 = vmul.f32 %v601_v46, %v591_v3  ;;  %v609_v54 = vmul.f32 %v605_v47, %v593_v5 }
  0xb2   : > { %v2428_v45 = vrot.slane %v391_v38, %v2297_v14 }
  0xb3   : > { %v612_v56 = vpack.c.bf16 %v610_v51, %v608_v53  ;;  %v613_v57 = vpack.c.bf16 %v611_v52, %v609_v54  ;;  %v619_v58 = vpop.permute.xlu1 %618  ;;  %v617_v59 = vpop.permute.xlu0 %616 }
  0xb5   : > { %729 = vmatprep.subr.bf16.mxu0 %v613_v57  ;;  %v2056_v57 = vld [vmem:[%s2951_s4 + $0x18] sm:$0xff] }
  0xb6   : > { %730 = vmatpush1.bf16.msra.mxu0 %v612_v56  ;;  %v2055_v56 = vld [vmem:[%s2951_s4 + $0x10] sm:$0xff] }
  0xb7   : > { %v623_v62 = vpop.permute.xlu1 %622  ;;  %v621_v63 = vpop.permute.xlu0 %620 }
  0xb8   : > { %v626_v6 = vsel %vm624_vm7, %v619_v58, %v623_v62  ;;  %v628_v8 = vsel %vm624_vm7, %v623_v62, %v619_v58  ;;  %v625_v9 = vsel %vm624_vm7, %v617_v59, %v621_v63  ;;  %v627_v10 = vsel %vm624_vm7, %v621_v63, %v617_v59 }
  0xb9   : > { %v644_v11 = vmul.f32 %v635_v60, %v626_v6  ;;  %v645_v15 = vmul.f32 %v639_v61, %v628_v8  ;;  %v642_v16 = vmul.f32 %v635_v60, %v625_v9  ;;  %v643_v17 = vmul.f32 %v639_v61, %v627_v10 }
  0xbb   : > { %v646_v19 = vpack.c.bf16 %v644_v11, %v642_v16  ;;  %v647_v20 = vpack.c.bf16 %v645_v15, %v643_v17  ;;  %v653_v21 = vpop.permute.xlu1 %652  ;;  %v651_v22 = vpop.permute.xlu0 %650  ;;  %v804_v17 = vld [vmem:[%s2949_s2] ss:$8 sm:$0x3] }
  0xbd   : > { %731 = vmatprep.subr.bf16.mxu0 %v647_v20  ;;  %v813_v20 = vrot.slane %v804_v17, %v2297_v14 }
  0xbe   : > { %732 = vmatpush1.bf16.msra.mxu0 %v646_v19  ;;  %v809_v19 = vrot.slane %v804_v17, %v2295_v13 }
  0xbf   : > { %v657_v25 = vpop.permute.xlu1 %656  ;;  %v655_v26 = vpop.permute.xlu0 %654 }
  0xc0   : > { %v660_v27 = vsel %vm658_vm8, %v653_v21, %v657_v25  ;;  %v662_v28 = vsel %vm658_vm8, %v657_v25, %v653_v21  ;;  %v659_v29 = vsel %vm658_vm8, %v651_v22, %v655_v26  ;;  %v661_v30 = vsel %vm658_vm8, %v655_v26, %v651_v22  ;;  %v2043_v22 = vld [vmem:[%s2949_s2 + $0x1] ss:$8 sm:$0x3] }
  0xc1   : > { %v678_v31 = vmul.f32 %v669_v23, %v660_v27  ;;  %v679_v32 = vmul.f32 %v673_v24, %v662_v28  ;;  %v676_v33 = vmul.f32 %v669_v23, %v659_v29  ;;  %v677_v34 = vmul.f32 %v673_v24, %v661_v30 }
  0xc2   : > { %v841_v28 = vrot.slane %v2043_v22, %v2295_v13  ;;  %v845_v29 = vrot.slane %v2043_v22, %v2297_v14 }
  0xc3   : > { %v680_v35 = vpack.c.bf16 %v678_v31, %v676_v33  ;;  %v681_v36 = vpack.c.bf16 %v679_v32, %v677_v34 }
  0xc5   : > { %733 = vmatprep.subr.bf16.mxu0 %v681_v36 }
  0xc6   : > { %734 = vmatpush1.bf16.msra.mxu0 %v680_v35  ;;  %v2044_v35 = vld [vmem:[%s2949_s2 + $0x2] ss:$8 sm:$0x3] }
  0xc9   : > { %750 = vmatmul.mubr.bf16.vlgmr.msra.gmra.mrb[0].mxu0 %v2107_v37 }
  0xd0   : > { %v769_v39 = vpop.permute.xlu0 %768  ;;  %v774_v42 = vpop.permute.xlu1 %773 }
 0x19c   : > { %v751_v41 = vpop.f32.mrb[0].mxu0 }
 0x19d   : > { %vm762_vm9 = vcmp.ge.f32.partialorder %v751_v41, 0.0  ;;  %v776_v43 = vmul.f32 %v769_v39, %v751_v41  ;;  %v753_v0 = vpop.f32.mrb[1].mxu0 }
 0x19e   : > { %vm763_vm10 = vcmp.ge.f32.partialorder %v753_v0, 0.0  ;;  %v777_v2 = vmul.f32 %v769_v39, %v753_v0  ;;  %v755_v4 = vpop.f32.mrb[2].mxu0 }
 0x19f   : > { %v780_v44 = vsel %vm762_vm9, %v751_v41, %v776_v43  ;;  %vm764_vm11 = vcmp.ge.f32.partialorder %v755_v4, 0.0  ;;  %v778_v46 = vmul.f32 %v774_v42, %v755_v4  ;;  %v757_v47 = vpop.f32.mrb[3].mxu0 }
 0x1a0   : > { %v784_v48 = vmul.f32 %v780_v44, %v2425_v40  ;;  %v781_v49 = vsel %vm763_vm10, %v753_v0, %v777_v2  ;;  %vm765_vm12 = vcmp.ge.f32.partialorder %v757_v47, 0.0  ;;  %v779_v50 = vmul.f32 %v774_v42, %v757_v47 }
 0x1a1   : > { %v782_v1 = vsel %vm764_vm11, %v755_v4, %v778_v46  ;;  %v785_v51 = vmul.f32 %v781_v49, %v2428_v45  ;;  %v873_v0 = vrot.slane %v2044_v35, %v2295_v13  ;;  %v877_v2 = vrot.slane %v2044_v35, %v2297_v14  ;;  %v2045_v49 = vld [vmem:[%s2949_s2 + $0x3] ss:$8 sm:$0x3] }
 0x1a2   : > { %v786_v3 = vmul.f32 %v782_v1, %v2425_v40  ;;  %v783_v5 = vsel %vm765_vm12, %v757_v47, %v779_v50  ;;  %792 = vrot.lane.b32.xlu1 %v784_v48, %s2125_s19 }
 0x1a3   : > { %v787_v52 = vmul.f32 %v783_v5, %v2428_v45 }
 0x1a4   : > { %794 = vrot.lane.b32.xlu0 %v786_v3, %s2125_s19  ;;  %v2436_v53 = vpack.c.bf16 %v786_v3, %v784_v48 }
 0x1a5   : > { %v2438_v54 = vpack.c.bf16 %v787_v52, %v785_v51 }
 0x1a6   : > { %824 = vrot.lane.b32.xlu1 %v784_v48, %s2126_s20 }
 0x1a8   : > { %826 = vrot.lane.b32.xlu0 %v786_v3, %s2126_s20 }
 0x1aa   : > { %856 = vrot.lane.b32.xlu1 %v784_v48, %s2127_s21 }
 0x1ac   : > { %858 = vrot.lane.b32.xlu0 %v786_v3, %s2127_s21 }
 0x1ae   : > { %888 = vrot.lane.b32.xlu1 %v784_v48, %s2128_s22 }
 0x1b0   : > { %890 = vrot.lane.b32.xlu0 %v786_v3, %s2128_s22 }
 0x1b2   : > { %922 = vrot.lane.b32.xlu1 %v784_v48, %s2129_s23 }
 0x1b4   : > { %924 = vrot.lane.b32.xlu0 %v786_v3, %s2129_s23 }
 0x1b6   : > { %954 = vrot.lane.b32.xlu1 %v784_v48, %s2130_s24 }
 0x1b8   : > { %956 = vrot.lane.b32.xlu0 %v786_v3, %s2130_s24 }
 0x1ba   : > { %986 = vrot.lane.b32.xlu1 %v784_v48, %s2131_s25 }
 0x1bc   : > { %988 = vrot.lane.b32.xlu0 %v786_v3, %s2131_s25 }
 0x1be   : > { %796 = vrot.lane.b32.xlu1 %v785_v51, %s2125_s19 }
 0x1c0   : > { %798 = vrot.lane.b32.xlu0 %v787_v52, %s2125_s19 }
 0x1c2   : > { %828 = vrot.lane.b32.xlu1 %v785_v51, %s2126_s20 }
 0x1c4   : > { %830 = vrot.lane.b32.xlu0 %v787_v52, %s2126_s20 }
 0x1c6   : > { %860 = vrot.lane.b32.xlu1 %v785_v51, %s2127_s21 }
 0x1c8   : > { %862 = vrot.lane.b32.xlu0 %v787_v52, %s2127_s21 }
 0x1ca   : > { %892 = vrot.lane.b32.xlu1 %v785_v51, %s2128_s22 }
 0x1cc   : > { %894 = vrot.lane.b32.xlu0 %v787_v52, %s2128_s22 }
 0x1ce   : > { %1018 = vrot.lane.b32.xlu1 %v784_v48, %s2132_s28 }
 0x1d0   : > { %1020 = vrot.lane.b32.xlu0 %v786_v3, %s2132_s28 }
 0x1d2   : > { %926 = vrot.lane.b32.xlu1 %v785_v51, %s2129_s23 }
 0x1d4   : > { %928 = vrot.lane.b32.xlu0 %v787_v52, %s2129_s23 }
 0x1d6   : > { %958 = vrot.lane.b32.xlu1 %v785_v51, %s2130_s24 }
 0x1d8   : > { %960 = vrot.lane.b32.xlu0 %v787_v52, %s2130_s24 }
 0x1da   : > { %990 = vrot.lane.b32.xlu1 %v785_v51, %s2131_s25 }
 0x1dc   : > { %992 = vrot.lane.b32.xlu0 %v787_v52, %s2131_s25 }
 0x1de   : > { %1022 = vrot.lane.b32.xlu1 %v785_v51, %s2132_s28 }
 0x1e0   : > { %1024 = vrot.lane.b32.xlu0 %v787_v52, %s2132_s28 }
 0x1e2   : > { %1139 = vperm.xlu1 %2106, %v2055_v56   ;;  %v905_v56 = vrot.slane %v2045_v49, %v2295_v13 }
 0x1e4   : > { %1144 = vperm.xlu0 %2105, %v2056_v57   ;;  %v909_v57 = vrot.slane %v2045_v49, %v2297_v14 }
 0x214   : > { %v793_v58 = vpop.permute.xlu1 %792 }
 0x216   : > { %v795_v59 = vpop.permute.xlu0 %794 }
 0x218   : > { %v825_v60 = vpop.permute.xlu1 %824 }
 0x21a   : > { %v827_v61 = vpop.permute.xlu0 %826 }
 0x21c   : > { %v857_v62 = vpop.permute.xlu1 %856 }
 0x21e   : > { %v859_v63 = vpop.permute.xlu0 %858 }
 0x220   : > { %v889_v6 = vpop.permute.xlu1 %888 }
 0x222   : > { %v2480_v8 = vpop.permute.xlu0 %890 }
 0x224   : > { %v2482_v9 = vpop.permute.xlu1 %922 }
 0x226   : > { %v2484_v10 = vpop.permute.xlu0 %924 }
 0x228   : > { %v2486_v11 = vpop.permute.xlu1 %954 }
 0x22a   : > { %v2488_v15 = vpop.permute.xlu0 %956 }
 0x22c   : > { %v2490_v16 = vpop.permute.xlu1 %986 }
 0x22e   : > { %v2495_v18 = vpop.permute.xlu0 %988 }
 0x230   : > { %v797_v21 = vpop.permute.xlu1 %796 }
 0x231   : > { %v800_v23 = vsel %vm417_vm1, %v793_v58, %v797_v21  ;;  %v802_v24 = vsel %vm417_vm1, %v797_v21, %v793_v58 }
 0x232   : > { %v799_v25 = vpop.permute.xlu0 %798  ;;  %v816_v30 = vmul.f32 %v809_v19, %v802_v24  ;;  %v817_v31 = vmul.f32 %v813_v20, %v800_v23 }
 0x233   : > { %v801_v26 = vsel %vm417_vm1, %v795_v59, %v799_v25  ;;  %v803_v27 = vsel %vm417_vm1, %v799_v25, %v795_v59 }
 0x234   : > { %v818_v32 = vmul.f32 %v809_v19, %v803_v27  ;;  %v819_v33 = vmul.f32 %v813_v20, %v801_v26  ;;  %v829_v34 = vpop.permute.xlu1 %828 }
 0x235   : > { %v832_v36 = vsel %vm450_vm2, %v825_v60, %v829_v34  ;;  %v834_v37 = vsel %vm450_vm2, %v829_v34, %v825_v60 }
 0x236   : > { %v820_v38 = vpack.c.bf16 %v818_v32, %v816_v30  ;;  %v821_v39 = vpack.c.bf16 %v819_v33, %v817_v31  ;;  %v831_v41 = vpop.permute.xlu0 %830  ;;  %v848_v4 = vmul.f32 %v841_v28, %v834_v37  ;;  %v849_v44 = vmul.f32 %v845_v29, %v832_v36 }
 0x237   : > { %v833_v42 = vsel %vm450_vm2, %v827_v61, %v831_v41  ;;  %v835_v43 = vsel %vm450_vm2, %v831_v41, %v827_v61 }
 0x238   : > { %v850_v46 = vmul.f32 %v841_v28, %v835_v43  ;;  %v851_v47 = vmul.f32 %v845_v29, %v833_v42  ;;  %v861_v48 = vpop.permute.xlu1 %860  ;;  %1083 = vmatprep.subr.bf16.mxu1 %v821_v39 }
 0x239   : > { %v864_v50 = vsel %vm484_vm3, %v857_v62, %v861_v48  ;;  %v866_v1 = vsel %vm484_vm3, %v861_v48, %v857_v62  ;;  %1084 = vmatpush1.bf16.msra.mxu1 %v820_v38 }
 0x23a   : > { %v852_v3 = vpack.c.bf16 %v850_v46, %v848_v4  ;;  %v853_v5 = vpack.c.bf16 %v851_v47, %v849_v44  ;;  %v863_v51 = vpop.permute.xlu0 %862  ;;  %v880_v58 = vmul.f32 %v873_v0, %v866_v1  ;;  %v881_v59 = vmul.f32 %v877_v2, %v864_v50  ;;  %v2048_v44 = vld [vmem:[%s2949_s2 + $0x7] ss:$8 sm:$0x3] }
 0x23b   : > { %v865_v52 = vsel %vm484_vm3, %v859_v63, %v863_v51  ;;  %v867_v55 = vsel %vm484_vm3, %v863_v51, %v859_v63 }
 0x23c   : > { %v882_v60 = vmul.f32 %v873_v0, %v867_v55  ;;  %v883_v61 = vmul.f32 %v877_v2, %v865_v52  ;;  %v893_v17 = vpop.permute.xlu1 %892  ;;  %1085 = vmatprep.subr.bf16.mxu1 %v853_v5  ;;  %v1007_v5 = vrot.slane %v2048_v44, %v2297_v14 }
 0x23d   : > { %v896_v62 = vsel %vm518_vm4, %v889_v6, %v893_v17  ;;  %v898_v19 = vsel %vm518_vm4, %v893_v17, %v889_v6  ;;  %1086 = vmatpush1.bf16.msra.mxu1 %v852_v3  ;;  %v2046_v6 = vld [vmem:[%s2949_s2 + $0x5] ss:$8 sm:$0x3]  ;;  %v1003_v3 = vrot.slane %v2048_v44, %v2295_v13 }
 0x23e   : > { %v884_v20 = vpack.c.bf16 %v882_v60, %v880_v58  ;;  %v885_v21 = vpack.c.bf16 %v883_v61, %v881_v59  ;;  %v895_v63 = vpop.permute.xlu0 %894  ;;  %v912_v24 = vmul.f32 %v905_v56, %v898_v19  ;;  %v913_v25 = vmul.f32 %v909_v57, %v896_v62 }
 0x23f   : > { %v897_v22 = vsel %vm518_vm4, %v2480_v8, %v895_v63  ;;  %v899_v23 = vsel %vm518_vm4, %v895_v63, %v2480_v8  ;;  %v939_v32 = vrot.slane %v2046_v6, %v2295_v13  ;;  %v943_v33 = vrot.slane %v2046_v6, %v2297_v14  ;;  %v2047_v8 = vld [vmem:[%s2949_s2 + $0x6] ss:$8 sm:$0x3] }
 0x240   : > { %v914_v26 = vmul.f32 %v905_v56, %v899_v23  ;;  %v915_v27 = vmul.f32 %v909_v57, %v897_v22  ;;  %v1019_v28 = vpop.permute.xlu1 %1018  ;;  %1087 = vmatprep.subr.bf16.mxu1 %v885_v21  ;;  %v971_v41 = vrot.slane %v2047_v8, %v2295_v13  ;;  %v975_v42 = vrot.slane %v2047_v8, %v2297_v14  ;;  %v2049_v57 = vld [vmem:[%s2949_s2 + $0x10] ss:$8 sm:$0x3] }
 0x241   : > { %1088 = vmatpush1.bf16.msra.mxu1 %v884_v20  ;;  %v1035_v19 = vrot.slane %v2049_v57, %v2295_v13  ;;  %v1039_v20 = vrot.slane %v2049_v57, %v2297_v14 }
 0x242   : > { %v916_v29 = vpack.c.bf16 %v914_v26, %v912_v24  ;;  %v917_v30 = vpack.c.bf16 %v915_v27, %v913_v25  ;;  %v1021_v31 = vpop.permute.xlu0 %1020 }
 0x244   : > { %v927_v34 = vpop.permute.xlu1 %926  ;;  %1089 = vmatprep.subr.bf16.mxu1 %v917_v30 }
 0x245   : > { %v930_v35 = vsel %vm556_vm5, %v2482_v9, %v927_v34  ;;  %v932_v36 = vsel %vm556_vm5, %v927_v34, %v2482_v9  ;;  %1090 = vmatpush1.bf16.msra.mxu1 %v916_v29 }
 0x246   : > { %v929_v37 = vpop.permute.xlu0 %928  ;;  %1091 = vmatprep.subr.bf16.mxu1 %v2438_v54  ;;  %v946_v43 = vmul.f32 %v939_v32, %v930_v35  ;;  %v947_v0 = vmul.f32 %v943_v33, %v932_v36 }
 0x247   : > { %v931_v38 = vsel %vm556_vm5, %v2484_v10, %v929_v37  ;;  %v933_v39 = vsel %vm556_vm5, %v929_v37, %v2484_v10 }
 0x248   : > { %v948_v2 = vmul.f32 %v939_v32, %v931_v38  ;;  %v949_v9 = vmul.f32 %v943_v33, %v933_v39  ;;  %v959_v4 = vpop.permute.xlu1 %958 }
 0x249   : > { %v962_v46 = vsel %vm590_vm6, %v2486_v11, %v959_v4  ;;  %v964_v10 = vsel %vm590_vm6, %v959_v4, %v2486_v11  ;;  %1092 = vmatpush1.bf16.msra.mxu1 %v2436_v53 }
 0x24a   : > { %v950_v47 = vpack.c.bf16 %v948_v2, %v946_v43  ;;  %v951_v48 = vpack.c.bf16 %v949_v9, %v947_v0  ;;  %v961_v49 = vpop.permute.xlu0 %960  ;;  %v978_v51 = vmul.f32 %v971_v41, %v962_v46  ;;  %v979_v52 = vmul.f32 %v975_v42, %v964_v10 }
 0x24b   : > { %v963_v50 = vsel %vm590_vm6, %v2488_v15, %v961_v49  ;;  %v965_v1 = vsel %vm590_vm6, %v961_v49, %v2488_v15 }
 0x24c   : > { %v980_v11 = vmul.f32 %v971_v41, %v963_v50  ;;  %v981_v55 = vmul.f32 %v975_v42, %v965_v1  ;;  %v991_v56 = vpop.permute.xlu1 %990  ;;  %1093 = vmatprep.subr.bf16.mxu1 %v951_v48  ;;  %v2113_v50 = vld [vmem:[%s2950_s3 + $0x24] ss:$8 sps:$4 sm:$0xff]  }
 0x24d   : > { %v994_v58 = vsel %vm624_vm7, %v2490_v16, %v991_v56  ;;  %v996_v15 = vsel %vm624_vm7, %v991_v56, %v2490_v16  ;;  %1094 = vmatpush1.bf16.msra.mxu1 %v950_v47  ;;  %2068 = vmatprep.mubr.msk.bf16.mxu0 %vm713_vm0, %v2113_v50  ;;  %v2069_v1 = vld [vmem:[%s2951_s4 + $0x20] sm:$0xff] }
 0x24e   : > { %v982_v59 = vpack.c.bf16 %v980_v11, %v978_v51  ;;  %v983_v60 = vpack.c.bf16 %v981_v55, %v979_v52  ;;  %v993_v61 = vpop.permute.xlu0 %992  ;;  %v1010_v21 = vmul.f32 %v1003_v3, %v994_v58  ;;  %v1011_v63 = vmul.f32 %v1007_v5, %v996_v15  ;;  %v1535_v51 = vld [vmem:[%s2953_s6 + $0x8] sm:$0xf] }
 0x24f   : > { %v995_v17 = vsel %vm624_vm7, %v2495_v18, %v993_v61  ;;  %v997_v62 = vsel %vm624_vm7, %v993_v61, %v2495_v18 }
 0x250   : > { %v1012_v22 = vmul.f32 %v1003_v3, %v995_v17  ;;  %v1013_v16 = vmul.f32 %v1007_v5, %v997_v62  ;;  %v1023_v23 = vpop.permute.xlu1 %1022  ;;  %1095 = vmatprep.subr.bf16.mxu1 %v983_v60  ;;  %v2070_v3 = vld [vmem:[%s2951_s4 + $0x28] sm:$0xff]  ;;  %v1534_v5 = vld [vmem:[%s2953_s6] sm:$0xff] }
 0x251   : > { %v1026_v24 = vsel %vm658_vm8, %v1019_v28, %v1023_v23  ;;  %v1028_v25 = vsel %vm658_vm8, %v1023_v23, %v1019_v28  ;;  %1096 = vmatpush1.bf16.msra.mxu1 %v982_v59  ;;  %v2110_v28 = vld [vmem:[%s2950_s3 + $0x10] ss:$8 sps:$4 sm:$0xff]   ;;  %v2057_v23 = vld [vmem:[%s2949_s2 + $0x1] ss:$8 sm:$0x3] }
 0x252   : > { %v1014_v26 = vpack.c.bf16 %v1012_v22, %v1010_v21  ;;  %v1015_v27 = vpack.c.bf16 %v1013_v16, %v1011_v63  ;;  %v1025_v18 = vpop.permute.xlu0 %1024  ;;  %v1042_v30 = vmul.f32 %v1035_v19, %v1026_v24  ;;  %v1043_v32 = vmul.f32 %v1039_v20, %v1028_v25 }
 0x253   : > { %v1027_v6 = vsel %vm658_vm8, %v1021_v31, %v1025_v18  ;;  %v1029_v29 = vsel %vm658_vm8, %v1025_v18, %v1021_v31 }
 0x254   : > { %v1044_v33 = vmul.f32 %v1035_v19, %v1027_v6  ;;  %v1045_v34 = vmul.f32 %v1039_v20, %v1029_v29  ;;  %1097 = vmatprep.subr.bf16.mxu1 %v1015_v27  ;;  %v1171_v20 = vld [vmem:[%s2949_s2] ss:$8 sm:$0x3]  ;;  %v1208_v6 = vrot.slane %v2057_v23, %v2295_v13  ;;  %v1212_v29 = vrot.slane %v2057_v23, %v2297_v14 }
 0x255   : > { %1098 = vmatpush1.bf16.msra.mxu1 %v1014_v26  ;;  %v1176_v63 = vrot.slane %v1171_v20, %v2295_v13  ;;  %v1180_v22 = vrot.slane %v1171_v20, %v2297_v14 }
 0x256   : > { %v1046_v8 = vpack.c.bf16 %v1044_v33, %v1042_v30  ;;  %v1047_v35 = vpack.c.bf16 %v1045_v34, %v1043_v32 }
 0x258   : > { %1099 = vmatprep.subr.bf16.mxu1 %v1047_v35  ;;  %v2058_v35 = vld [vmem:[%s2949_s2 + $0x2] ss:$8 sm:$0x3] }
 0x259   : > { %1100 = vmatpush1.bf16.msra.mxu1 %v1046_v8 }
 0x25a   : > { %1555 = vmatprep.subr.bf16.mxu1 %v2438_v54 }
 0x25c   : > { %1116 = vmatmul.mubr.bf16.vlgmr.msra.gmra.mrb[0].mxu1 %v2110_v28 }
 0x25d   : > { %1556 = vmatpush1.bf16.msra.mxu1 %v2436_v53  ;;  %1587 = vmatprep.mubr.bf16.mxu1 %v2133_v7 }
 0x261   : > { %v1140_v38 = vpop.permute.xlu1 %1139 }
 0x263   : > { %v1145_v2 = vpop.permute.xlu0 %1144 }
 0x32f   : > { %v1117_v31 = vpop.f32.mrb[0].mxu1 }
 0x330   : > { %v1129_v36 = vmul.f32 %v1117_v31, %v2425_v40  ;;  %v1119_v37 = vpop.f32.mrb[1].mxu1 }
 0x331   : > { %v1130_v39 = vmul.f32 %v1119_v37, %v2428_v45  ;;  %v1121_v41 = vpop.f32.mrb[2].mxu1 }
 0x332   : > { %vm1133_vm13 = vcmp.ge.f32.partialorder %v1129_v36, 0.0  ;;  %v1147_v42 = vmul.f32 %v1140_v38, %v1129_v36  ;;  %v1131_v43 = vmul.f32 %v1121_v41, %v2425_v40  ;;  %v1123_v0 = vpop.f32.mrb[3].mxu1 }
 0x333   : > { %v1148_v54 = vmul.f32 %v1140_v38, %v1130_v39  ;;  %v1132_v9 = vmul.f32 %v1123_v0, %v2428_v45  ;;  %vm1134_vm14 = vcmp.ge.f32.partialorder %v1130_v39, 0.0 }
 0x334   : > { %v1151_v53 = vsel %vm1133_vm13, %v1129_v36, %v1147_v42  ;;  %vm1135_vm15 = vcmp.ge.f32.partialorder %v1131_v43, 0.0  ;;  %v1149_v4 = vmul.f32 %v1145_v2, %v1131_v43  ;;  %v1240_v42 = vrot.slane %v2058_v35, %v2295_v13 }
 0x335   : > { %vm1136_vm9 = vcmp.ge.f32.partialorder %v1132_v9, 0.0  ;;  %v1150_v44 = vmul.f32 %v1145_v2, %v1132_v9  ;;  %1159 = vrot.lane.b32.xlu1 %v1151_v53, %s2125_s19  ;;  %v1152_v10 = vsel %vm1134_vm14, %v1130_v39, %v1148_v54  ;;  %vm1551_vm13 = vcmask 392192  }
 0x336   : > { %v1153_v46 = vsel %vm1135_vm15, %v1131_v43, %v1149_v4  ;;  %v1244_v43 = vrot.slane %v2058_v35, %v2297_v14  ;;  %v2059_v4 = vld [vmem:[%s2949_s2 + $0x3] ss:$8 sm:$0x3]  ;;  %vm1606_vm14 = vcmask 1043456  }
 0x337   : > { %v1154_v47 = vsel %vm1136_vm9, %v1132_v9, %v1150_v44  ;;  %1161 = vrot.lane.b32.xlu0 %v1153_v46, %s2125_s19  ;;  %v2626_v48 = vpack.c.bf16 %v1153_v46, %v1151_v53 }
 0x338   : > { %v2628_v49 = vpack.c.bf16 %v1154_v47, %v1152_v10 }
 0x339   : > { %1191 = vrot.lane.b32.xlu1 %v1151_v53, %s2126_s20  ;;  %1287 = vst [vmem:[#allocation2 + $0x40] sm:$0xff] %v2626_v48 }
 0x33a   : > { %1288 = vst [vmem:[#allocation2 + $0x48] sm:$0xff] %v2628_v49  ;;  %1557 = vmatprep.subr.bf16.mxu1 %v2628_v49 }
 0x33b   : > { %1193 = vrot.lane.b32.xlu0 %v1153_v46, %s2126_s20  ;;  %1558 = vmatpush1.bf16.msra.mxu1 %v2626_v48 }
 0x33d   : > { %1223 = vrot.lane.b32.xlu1 %v1151_v53, %s2127_s21 }
 0x33f   : > { %1225 = vrot.lane.b32.xlu0 %v1153_v46, %s2127_s21 }
 0x341   : > { %1255 = vrot.lane.b32.xlu1 %v1151_v53, %s2128_s22 }
 0x343   : > { %1257 = vrot.lane.b32.xlu0 %v1153_v46, %s2128_s22 }
 0x345   : > { %1289 = vrot.lane.b32.xlu1 %v1151_v53, %s2129_s23 }
 0x347   : > { %1291 = vrot.lane.b32.xlu0 %v1153_v46, %s2129_s23 }
 0x349   : > { %1321 = vrot.lane.b32.xlu1 %v1151_v53, %s2130_s24 }
 0x34b   : > { %1323 = vrot.lane.b32.xlu0 %v1153_v46, %s2130_s24 }
 0x34d   : > { %1353 = vrot.lane.b32.xlu1 %v1151_v53, %s2131_s25 }
 0x34f   : > { %1355 = vrot.lane.b32.xlu0 %v1153_v46, %s2131_s25 }
 0x351   : > { %1163 = vrot.lane.b32.xlu1 %v1152_v10, %s2125_s19 }
 0x353   : > { %1165 = vrot.lane.b32.xlu0 %v1154_v47, %s2125_s19 }
 0x355   : > { %1195 = vrot.lane.b32.xlu1 %v1152_v10, %s2126_s20 }
 0x357   : > { %1197 = vrot.lane.b32.xlu0 %v1154_v47, %s2126_s20 }
 0x359   : > { %1227 = vrot.lane.b32.xlu1 %v1152_v10, %s2127_s21 }
 0x35b   : > { %1229 = vrot.lane.b32.xlu0 %v1154_v47, %s2127_s21 }
 0x35d   : > { %1259 = vrot.lane.b32.xlu1 %v1152_v10, %s2128_s22 }
 0x35f   : > { %1261 = vrot.lane.b32.xlu0 %v1154_v47, %s2128_s22 }
 0x361   : > { %1385 = vrot.lane.b32.xlu1 %v1151_v53, %s2132_s28 }
 0x363   : > { %1387 = vrot.lane.b32.xlu0 %v1153_v46, %s2132_s28 }
 0x365   : > { %1293 = vrot.lane.b32.xlu1 %v1152_v10, %s2129_s23 }
 0x367   : > { %1295 = vrot.lane.b32.xlu0 %v1154_v47, %s2129_s23 }
 0x369   : > { %1325 = vrot.lane.b32.xlu1 %v1152_v10, %s2130_s24 }
 0x36b   : > { %1327 = vrot.lane.b32.xlu0 %v1154_v47, %s2130_s24 }
 0x36d   : > { %1357 = vrot.lane.b32.xlu1 %v1152_v10, %s2131_s25 }
 0x36f   : > { %1359 = vrot.lane.b32.xlu0 %v1154_v47, %s2131_s25 }
 0x371   : > { %1389 = vrot.lane.b32.xlu1 %v1152_v10, %s2132_s28 }
 0x373   : > { %1391 = vrot.lane.b32.xlu0 %v1154_v47, %s2132_s28 }
 0x375   : > { %1506 = vperm.xlu1 %2106, %v2069_v1  }
 0x377   : > { %1511 = vperm.xlu0 %2105, %v2070_v3  }
 0x379   : > { %1538 = vperm.xlu1 %2106, %v1534_v5   ;;  %v1272_v5 = vrot.slane %v2059_v4, %v2295_v13 }
 0x37b   : > { %1543 = vperm.xlu0 %2105, %v1535_v51   ;;  %v1276_v51 = vrot.slane %v2059_v4, %v2297_v14 }
 0x3a7   : > { %v1160_v52 = vpop.permute.xlu1 %1159 }
 0x3a9   : > { %v1162_v11 = vpop.permute.xlu0 %1161 }
 0x3ab   : > { %v1192_v55 = vpop.permute.xlu1 %1191 }
 0x3ad   : > { %v1194_v56 = vpop.permute.xlu0 %1193 }
 0x3af   : > { %v1224_v57 = vpop.permute.xlu1 %1223 }
 0x3b1   : > { %v1226_v58 = vpop.permute.xlu0 %1225 }
 0x3b3   : > { %v2680_v15 = vpop.permute.xlu1 %1255 }
 0x3b5   : > { %v2682_v59 = vpop.permute.xlu0 %1257 }
 0x3b7   : > { %v2684_v60 = vpop.permute.xlu1 %1289 }
 0x3b9   : > { %v2686_v61 = vpop.permute.xlu0 %1291 }
 0x3bb   : > { %v2688_v17 = vpop.permute.xlu1 %1321 }
 0x3bd   : > { %v2690_v62 = vpop.permute.xlu0 %1323 }
 0x3bf   : > { %v2692_v19 = vpop.permute.xlu1 %1353 }
 0x3c1   : > { %v2697_v21 = vpop.permute.xlu0 %1355 }
 0x3c3   : > { %v1164_v16 = vpop.permute.xlu1 %1163 }
 0x3c4   : > { %v1167_v24 = vsel %vm417_vm1, %v1160_v52, %v1164_v16  ;;  %v1169_v25 = vsel %vm417_vm1, %v1164_v16, %v1160_v52 }
 0x3c5   : > { %v1166_v26 = vpop.permute.xlu0 %1165  ;;  %v1183_v30 = vmul.f32 %v1176_v63, %v1169_v25  ;;  %v1184_v32 = vmul.f32 %v1180_v22, %v1167_v24 }
 0x3c6   : > { %v1168_v27 = vsel %vm417_vm1, %v1162_v11, %v1166_v26  ;;  %v1170_v18 = vsel %vm417_vm1, %v1166_v26, %v1162_v11 }
 0x3c7   : > { %v1185_v33 = vmul.f32 %v1176_v63, %v1170_v18  ;;  %v1186_v34 = vmul.f32 %v1180_v22, %v1168_v27  ;;  %v1196_v8 = vpop.permute.xlu1 %1195 }
 0x3c8   : > { %v1199_v28 = vsel %vm450_vm2, %v1192_v55, %v1196_v8  ;;  %v1201_v31 = vsel %vm450_vm2, %v1196_v8, %v1192_v55  ;;  %v2061_v8 = vld [vmem:[%s2949_s2 + $0x6] ss:$8 sm:$0x3] }
 0x3c9   : > { %v1187_v36 = vpack.c.bf16 %v1185_v33, %v1183_v30  ;;  %v1188_v37 = vpack.c.bf16 %v1186_v34, %v1184_v32  ;;  %v1198_v38 = vpop.permute.xlu0 %1197  ;;  %v1215_v0 = vmul.f32 %v1208_v6, %v1201_v31  ;;  %v1216_v2 = vmul.f32 %v1212_v29, %v1199_v28 }
 0x3ca   : > { %v1200_v39 = vsel %vm450_vm2, %v1194_v56, %v1198_v38  ;;  %v1202_v41 = vsel %vm450_vm2, %v1198_v38, %v1194_v56  ;;  %v1338_v38 = vrot.slane %v2061_v8, %v2295_v13 }
 0x3cb   : > { %1189 = vst [vmem:[#allocation2] sm:$0xff] %v1187_v36  ;;  %1190 = vst [vmem:[#allocation2 + $0x8] sm:$0xff] %v1188_v37  ;;  %v1217_v54 = vmul.f32 %v1208_v6, %v1202_v41  ;;  %v1218_v9 = vmul.f32 %v1212_v29, %v1200_v39  ;;  %v1228_v53 = vpop.permute.xlu1 %1227  ;;  %1450 = vmatprep.subr.bf16.mxu0 %v1188_v37  ;;  %v1342_v39 = vrot.slane %v2061_v8, %v2297_v14 }
 0x3cc   : > { %v1231_v44 = vsel %vm484_vm3, %v1224_v57, %v1228_v53  ;;  %v1233_v46 = vsel %vm484_vm3, %v1228_v53, %v1224_v57  ;;  %1451 = vmatpush1.bf16.msra.mxu0 %v1187_v36 }
 0x3cd   : > { %v1219_v10 = vpack.c.bf16 %v1217_v54, %v1215_v0  ;;  %v1220_v47 = vpack.c.bf16 %v1218_v9, %v1216_v2  ;;  %v1230_v50 = vpop.permute.xlu0 %1229  ;;  %v1247_v52 = vmul.f32 %v1240_v42, %v1233_v46  ;;  %v1248_v11 = vmul.f32 %v1244_v43, %v1231_v44 }
 0x3ce   : > { %v1232_v1 = vsel %vm484_vm3, %v1226_v58, %v1230_v50  ;;  %v1234_v3 = vsel %vm484_vm3, %v1230_v50, %v1226_v58 }
 0x3cf   : > { %1221 = vst [vmem:[#allocation2 + $0x10] sm:$0xff] %v1219_v10  ;;  %1222 = vst [vmem:[#allocation2 + $0x18] sm:$0xff] %v1220_v47  ;;  %v1249_v55 = vmul.f32 %v1240_v42, %v1234_v3  ;;  %v1250_v56 = vmul.f32 %v1244_v43, %v1232_v1  ;;  %v1260_v57 = vpop.permute.xlu1 %1259  ;;  %1452 = vmatprep.subr.bf16.mxu0 %v1220_v47  ;;  %v2063_v3 = vld [vmem:[%s2949_s2 + $0x10] ss:$8 sm:$0x3] }
 0x3d0   : > { %v1263_v20 = vsel %vm518_vm4, %v2680_v15, %v1260_v57  ;;  %v1265_v58 = vsel %vm518_vm4, %v1260_v57, %v2680_v15  ;;  %1453 = vmatpush1.bf16.msra.mxu0 %v1219_v10  ;;  %v2060_v15 = vld [vmem:[%s2949_s2 + $0x5] ss:$8 sm:$0x3]  ;;  %v1402_v57 = vrot.slane %v2063_v3, %v2295_v13 }
 0x3d1   : > { %v1251_v63 = vpack.c.bf16 %v1249_v55, %v1247_v52  ;;  %v1252_v22 = vpack.c.bf16 %v1250_v56, %v1248_v11  ;;  %v1262_v16 = vpop.permute.xlu0 %1261  ;;  %v1279_v25 = vmul.f32 %v1272_v5, %v1265_v58  ;;  %v1280_v26 = vmul.f32 %v1276_v51, %v1263_v20 }
 0x3d2   : > { %v1264_v23 = vsel %vm518_vm4, %v2682_v59, %v1262_v16  ;;  %v1266_v24 = vsel %vm518_vm4, %v1262_v16, %v2682_v59  ;;  %v1306_v59 = vrot.slane %v2060_v15, %v2295_v13  ;;  %v1310_v33 = vrot.slane %v2060_v15, %v2297_v14 }
 0x3d3   : > { %1253 = vst [vmem:[#allocation2 + $0x20] sm:$0xff] %v1251_v63  ;;  %1254 = vst [vmem:[#allocation2 + $0x28] sm:$0xff] %v1252_v22  ;;  %v1281_v27 = vmul.f32 %v1272_v5, %v1266_v24  ;;  %v1282_v18 = vmul.f32 %v1276_v51, %v1264_v23  ;;  %v2752_v6 = vpop.permute.xlu1 %1385  ;;  %1454 = vmatprep.subr.bf16.mxu0 %v1252_v22  ;;  %v1406_v20 = vrot.slane %v2063_v3, %v2297_v14 }
 0x3d4   : > { %1455 = vmatpush1.bf16.msra.mxu0 %v1251_v63 }
 0x3d5   : > { %v1283_v29 = vpack.c.bf16 %v1281_v27, %v1279_v25  ;;  %v1284_v30 = vpack.c.bf16 %v1282_v18, %v1280_v26  ;;  %v2757_v32 = vpop.permute.xlu0 %1387 }
 0x3d7   : > { %1285 = vst [vmem:[#allocation2 + $0x30] sm:$0xff] %v1283_v29  ;;  %1286 = vst [vmem:[#allocation2 + $0x38] sm:$0xff] %v1284_v30  ;;  %v1294_v34 = vpop.permute.xlu1 %1293  ;;  %1456 = vmatprep.subr.bf16.mxu0 %v1284_v30 }
 0x3d8   : > { %v1297_v35 = vsel %vm556_vm5, %v2684_v60, %v1294_v34  ;;  %v1299_v28 = vsel %vm556_vm5, %v1294_v34, %v2684_v60  ;;  %1457 = vmatpush1.bf16.msra.mxu0 %v1283_v29  ;;  %v2115_v34 = vld [vmem:[%s2950_s3 + $0x20] ss:$8 sps:$4 sm:$0xff]  }
 0x3d9   : > { %v1296_v31 = vpop.permute.xlu0 %1295  ;;  %1458 = vmatprep.subr.bf16.mxu0 %v2628_v49  ;;  %v1313_v41 = vmul.f32 %v1306_v59, %v1297_v35  ;;  %v1314_v42 = vmul.f32 %v1310_v33, %v1299_v28  ;;  %v2062_v49 = vld [vmem:[%s2949_s2 + $0x7] ss:$8 sm:$0x3] }
 0x3da   : > { %v1298_v36 = vsel %vm556_vm5, %v2686_v61, %v1296_v31  ;;  %v1300_v37 = vsel %vm556_vm5, %v1296_v31, %v2686_v61  ;;  %v1370_v46 = vrot.slane %v2062_v49, %v2295_v13  ;;  %v1374_v10 = vrot.slane %v2062_v49, %v2297_v14 }
 0x3db   : > { %v1315_v43 = vmul.f32 %v1306_v59, %v1298_v36  ;;  %v1316_v60 = vmul.f32 %v1310_v33, %v1300_v37  ;;  %v1326_v0 = vpop.permute.xlu1 %1325 }
 0x3dc   : > { %v1329_v2 = vsel %vm590_vm6, %v2688_v17, %v1326_v0  ;;  %v1331_v61 = vsel %vm590_vm6, %v1326_v0, %v2688_v17  ;;  %1459 = vmatpush1.bf16.msra.mxu0 %v2626_v48 }
 0x3dd   : > { %v1317_v54 = vpack.c.bf16 %v1315_v43, %v1313_v41  ;;  %v1318_v9 = vpack.c.bf16 %v1316_v60, %v1314_v42  ;;  %v1328_v53 = vpop.permute.xlu0 %1327  ;;  %v1345_v47 = vmul.f32 %v1338_v38, %v1329_v2  ;;  %v1346_v50 = vmul.f32 %v1342_v39, %v1331_v61 }
 0x3de   : > { %v1330_v4 = vsel %vm590_vm6, %v2690_v62, %v1328_v53  ;;  %v1332_v44 = vsel %vm590_vm6, %v1328_v53, %v2690_v62 }
 0x3df   : > { %v1347_v17 = vmul.f32 %v1338_v38, %v1330_v4  ;;  %v1348_v1 = vmul.f32 %v1342_v39, %v1332_v44  ;;  %v1358_v48 = vpop.permute.xlu1 %1357  ;;  %1460 = vmatprep.subr.bf16.mxu0 %v1318_v9 }
 0x3e0   : > { %v1361_v5 = vsel %vm624_vm7, %v2692_v19, %v1358_v48  ;;  %v1363_v62 = vsel %vm624_vm7, %v1358_v48, %v2692_v19  ;;  %1461 = vmatpush1.bf16.msra.mxu0 %v1317_v54 }
 0x3e1   : > { %v1349_v51 = vpack.c.bf16 %v1347_v17, %v1345_v47  ;;  %v1350_v52 = vpack.c.bf16 %v1348_v1, %v1346_v50  ;;  %v1360_v11 = vpop.permute.xlu0 %1359  ;;  %v1377_v58 = vmul.f32 %v1370_v46, %v1361_v5  ;;  %v1378_v63 = vmul.f32 %v1374_v10, %v1363_v62 }
 0x3e2   : > { %v1362_v55 = vsel %vm624_vm7, %v2697_v21, %v1360_v11  ;;  %v1364_v56 = vsel %vm624_vm7, %v1360_v11, %v2697_v21 }
 0x3e3   : > { %v1379_v22 = vmul.f32 %v1370_v46, %v1362_v55  ;;  %v1380_v19 = vmul.f32 %v1374_v10, %v1364_v56  ;;  %v1390_v16 = vpop.permute.xlu1 %1389  ;;  %1462 = vmatprep.subr.bf16.mxu0 %v1350_v52 }
 0x3e4   : > { %v1393_v23 = vsel %vm658_vm8, %v2752_v6, %v1390_v16  ;;  %v1395_v24 = vsel %vm658_vm8, %v1390_v16, %v2752_v6  ;;  %1463 = vmatpush1.bf16.msra.mxu0 %v1349_v51  ;;  %v1621_v16 = vld [vmem:[%s2949_s2] ss:$8 sm:$0x3] }
 0x3e5   : > { %v1381_v21 = vpack.c.bf16 %v1379_v22, %v1377_v58  ;;  %v1382_v25 = vpack.c.bf16 %v1380_v19, %v1378_v63  ;;  %v1392_v26 = vpop.permute.xlu0 %1391  ;;  %v1409_v15 = vmul.f32 %v1402_v57, %v1393_v23  ;;  %v1410_v29 = vmul.f32 %v1406_v20, %v1395_v24  ;;  %v2073_v58 = vld [vmem:[%s2949_s2 + $0x1] ss:$8 sm:$0x3] }
 0x3e6   : > { %v1394_v27 = vsel %vm658_vm8, %v2757_v32, %v1392_v26  ;;  %v1396_v18 = vsel %vm658_vm8, %v1392_v26, %v2757_v32  ;;  %v1650_v63 = vrot.slane %v2073_v58, %v2295_v13  ;;  %v1654_v22 = vrot.slane %v2073_v58, %v2297_v14 }
 0x3e7   : > { %v1411_v30 = vmul.f32 %v1402_v57, %v1394_v27  ;;  %v1412_v59 = vmul.f32 %v1406_v20, %v1396_v18  ;;  %1464 = vmatprep.subr.bf16.mxu0 %v1382_v25  ;;  %v1852_v20 = vld [vmem:[%s2955_s8] sm:$0x3]  ;;  %v1626_v27 = vrot.slane %v1621_v16, %v2295_v13  ;;  %v1630_v18 = vrot.slane %v1621_v16, %v2297_v14 }
 0x3e8   : > { %1465 = vmatpush1.bf16.msra.mxu0 %v1381_v21 }
 0x3e9   : > { %v1413_v33 = vpack.c.bf16 %v1411_v30, %v1409_v15  ;;  %v1414_v6 = vpack.c.bf16 %v1412_v59, %v1410_v29  ;;  %v2075_v15 = vld [vmem:[%s2949_s2 + $0x3] ss:$8 sm:$0x3] }
 0x3eb   : > { %1466 = vmatprep.subr.bf16.mxu0 %v1414_v6 }
 0x3ec   : > { %1467 = vmatpush1.bf16.msra.mxu0 %v1413_v33 }
 0x3ef   : > { %1483 = vmatmul.mubr.bf16.vlgmr.msra.gmra.mrb[4].mxu0 %v2115_v34 }
 0x3f4   : > { %v1507_v32 = vpop.permute.xlu1 %1506 }
 0x3f6   : > { %v1512_v41 = vpop.permute.xlu0 %1511 }
 0x3fa   : > { %v1544_v10 = vpop.permute.xlu0 %1543 }
 0x4c2   : > { %v1484_v8 = vpop.f32.mrb[4].mxu0 }
 0x4c3   : > { %v1496_v35 = vmul.f32 %v1484_v8, %v2425_v40  ;;  %v1486_v28 = vpop.f32.mrb[5].mxu0  ;;  %v1704_v8 = vrot.slane %v2075_v15, %v2295_v13 }
 0x4c4   : > { %v1497_v31 = vmul.f32 %v1486_v28, %v2428_v45  ;;  %v1488_v36 = vpop.f32.mrb[6].mxu0 }
 0x4c5   : > { %v1514_v37 = vmul.f32 %v1507_v32, %v1496_v35  ;;  %v1498_v38 = vmul.f32 %v1488_v36, %v2425_v40  ;;  %v1490_v39 = vpop.f32.mrb[7].mxu0  ;;  %vm1500_vm0 = vcmp.ge.f32.partialorder %v1496_v35, 0.0  ;;  %v2116_v40 = vld [vmem:[%s2952_s5] sm:$0x3f]  }
 0x4c6   : > { %v1515_v42 = vmul.f32 %v1507_v32, %v1497_v31  ;;  %v1499_v43 = vmul.f32 %v1490_v39, %v2428_v45  ;;  %vm1501_vm10 = vcmp.ge.f32.partialorder %v1497_v31, 0.0  ;;  %v1539_v45 = vpop.permute.xlu1 %1538 }
 0x4c7   : > { %vm1502_vm11 = vcmp.ge.f32.partialorder %v1498_v38, 0.0  ;;  %v1516_v60 = vmul.f32 %v1512_v41, %v1498_v38  ;;  %v1518_v49 = vsel %vm1500_vm0, %v1496_v35, %v1514_v37  ;;  %v1708_v35 = vrot.slane %v2075_v15, %v2297_v14 }
 0x4c8   : > { %vm1503_vm12 = vcmp.ge.f32.partialorder %v1499_v43, 0.0  ;;  %v1517_v0 = vmul.f32 %v1512_v41, %v1499_v43  ;;  %v1519_v54 = vsel %vm1501_vm10, %v1497_v31, %v1515_v42 }
 0x4c9   : > { %v1520_v2 = vsel %vm1502_vm11, %v1498_v38, %v1516_v60  ;;  %v2074_v38 = vld [vmem:[%s2949_s2 + $0x2] ss:$8 sm:$0x3] }
 0x4ca   : > { %v1522_v61 = vpack.c.bf16 %v1520_v2, %v1518_v49  ;;  %v1521_v9 = vsel %vm1503_vm12, %v1499_v43, %v1517_v0  ;;  %v1680_v2 = vrot.slane %v2074_v38, %v2295_v13 }
 0x4cb   : > { %v1523_v53 = vpack.c.bf16 %v1521_v9, %v1519_v54  ;;  %v2076_v54 = vld [vmem:[%s2949_s2 + $0x5] ss:$8 sm:$0x3] }
 0x4cd   : > { %1559 = vmatprep.subr.bf16.mxu1 %v1523_v53 }
 0x4ce   : > { %1560 = vmatpush1.bf16.msra.mxu1 %v1522_v61  ;;  %v1684_v61 = vrot.slane %v2074_v38, %v2297_v14 }
 0x4d1   : > { %2072 = vmatmul.mubr.msk.bf16.vlgmr.msra.gmra.mrb[4].mxu1 %vm1551_vm13, %v2116_v40 }
 0x4d2   : > { %1900 = vmatprep.mubr.bf16.mxu1 %v2133_v7 }
 0x5a4   : > { %v1589_v4 = vpop.f32.mrb[4].mxu1 }
 0x5a5   : > { %v1590_v44 = vadd.f32 %v1589_v4, %v1539_v45  ;;  %v1591_v46 = vpop.f32.mrb[5].mxu1 }
 0x5a6   : > { %v1592_v47 = vadd.f32 %v1591_v46, %v1539_v45  ;;  %v1593_v50 = vpop.f32.mrb[6].mxu1  ;;  %v1744_v46 = vrot.slane %v2076_v54, %v2295_v13 }
 0x5a7   : > { %1598 = vst [vmem:[%s384_s30] sm:$0xff] %v1590_v44  ;;  %v1594_v17 = vadd.f32 %v1593_v50, %v1544_v10  ;;  %v1595_v1 = vpop.f32.mrb[7].mxu1  ;;  %v1607_v3 = vrot.slane %v1590_v44, 4 }
 0x5a8   : > { %1599 = vst [vmem:[%s384_s30 + $0x8] sm:$0xff] %v1592_v47  ;;  %v1596_v48 = vadd.f32 %v1595_v1, %v1544_v10  ;;  %v1610_v62 = vrot.slane %v1592_v47, 4  ;;  %v1748_v10 = vrot.slane %v2076_v54, %v2297_v14 }
 0x5a9   : > { %1600 = vst [vmem:[%s384_s30 + $0x10] sm:$0xf] %v1594_v17  ;;  %v1608_v7 = vrot.slane %v1594_v17, 4  ;;  %v1723_v5 = vpack.c.bf16 %v1594_v17, %v1590_v44 }
 0x5aa   : > { %1601 = vst [vmem:[%s384_s30 + $0x18] sm:$0xf] %v1596_v48  ;;  %v1611_v51 = vrot.slane %v1596_v48, 4  ;;  %v1724_v52 = vpack.c.bf16 %v1596_v48, %v1592_v47 }
 0x5ab   : > { %v1609_v11 = vsel %vm1606_vm14, %v1607_v3, %v1608_v7  ;;  %v1727_v55 = vrot.slane %v1723_v5, 2  ;;  %v2078_v3 = vld [vmem:[%s2949_s2 + $0x7] ss:$8 sm:$0x3] }
 0x5ac   : > { %v1612_v56 = vsel %vm1606_vm14, %v1610_v62, %v1611_v51  ;;  %v1728_v57 = vrot.slane %v1724_v52, 2  ;;  %1639 = vrot.lane.b32.xlu1 %v1609_v11, %s2126_s20  ;;  %v1802_v58 = vrot.slane %v2078_v3, %v2297_v14 }
 0x5ad   : > { %1731 = vst [vmem:[#allocation2 + $0x20] sm:$0xf] %v1727_v55  ;;  %1641 = vrot.lane.b32.xlu0 %v1612_v56, %s2126_s20  ;;  %s2087_s20 = sshll.u32 %s2959_s14, 2 }
 0x5ae   : > { %1732 = vst [vmem:[#allocation2 + $0x28] sm:$0xf] %v1728_v57 }
 0x5b0   : > { %1615 = vrot.lane.b32.xlu1 %v1609_v11, %s2125_s19 }
 0x5b1   : > { %1617 = vrot.lane.b32.xlu0 %v1612_v56, %s2125_s19 }
 0x5b4   : > { %1693 = vrot.lane.b32.xlu1 %v1609_v11, %s2128_s22 }
 0x5b5   : > { %1695 = vrot.lane.b32.xlu0 %v1612_v56, %s2128_s22 }
 0x5b8   : > { %1669 = vrot.lane.b32.xlu1 %v1609_v11, %s2127_s21 }
 0x5b9   : > { %1671 = vrot.lane.b32.xlu0 %v1612_v56, %s2127_s21 }
 0x5bc   : > { %1733 = vrot.lane.b32.xlu1 %v1609_v11, %s2129_s23 }
 0x5bd   : > { %1735 = vrot.lane.b32.xlu0 %v1612_v56, %s2129_s23  ;;  %s389_s23 = scalar_lea.vmem %s2957_s10, %s2087_s20 }
 0x5c0   : > { %1787 = vrot.lane.b32.xlu1 %v1609_v11, %s2131_s25 }
 0x5c1   : > { %1789 = vrot.lane.b32.xlu0 %v1612_v56, %s2131_s25 }
 0x5c4   : > { %1763 = vrot.lane.b32.xlu1 %v1609_v11, %s2130_s24 }
 0x5c5   : > { %1765 = vrot.lane.b32.xlu0 %v1612_v56, %s2130_s24 }
 0x5c8   : > { %1817 = vrot.lane.b32.xlu1 %v1609_v11, %s2132_s28 }
 0x5c9   : > { %1819 = vrot.lane.b32.xlu0 %v1612_v56, %s2132_s28 }
 0x5cc   : > { %1855 = vperm.xlu1 %2106, %v1852_v20   ;;  %v1798_v20 = vrot.slane %v2078_v3, %v2295_v13 }
 0x61e   : > { %v1640_v19 = vpop.permute.xlu1 %1639 }
 0x61f   : > { %v1642_v23 = vpop.permute.xlu0 %1641 }
 0x620   : > { %v1643_v24 = vsel %vm450_vm2, %v1640_v19, %v1642_v23  ;;  %v1644_v21 = vsel %vm450_vm2, %v1642_v23, %v1640_v19 }
 0x621   : > { %v1657_v25 = vmul.f32 %v1650_v63, %v1644_v21  ;;  %v1658_v26 = vmul.f32 %v1654_v22, %v1643_v24  ;;  %v2077_v63 = vld [vmem:[%s2949_s2 + $0x6] ss:$8 sm:$0x3] }
 0x622   : > { %v1616_v29 = vpop.permute.xlu1 %1615 }
 0x623   : > { %v1659_v30 = vpack.c.bf16 %v1657_v25, %v1657_v25  ;;  %v1660_v59 = vpack.c.bf16 %v1658_v26, %v1658_v26  ;;  %v1618_v33 = vpop.permute.xlu0 %1617  ;;  %v1774_v25 = vrot.slane %v2077_v63, %v2295_v13  ;;  %v1778_v26 = vrot.slane %v2077_v63, %v2297_v14 }
 0x624   : > { %v1619_v6 = vsel %vm417_vm1, %v1616_v29, %v1618_v33  ;;  %v1620_v34 = vsel %vm417_vm1, %v1618_v33, %v1616_v29  ;;  %vm1858_vm1 = vcmask 588800  }
 0x625   : > { %v1663_v28 = vrot.slane %v1659_v30, 4  ;;  %v1664_v32 = vrot.slane %v1660_v59, 4  ;;  %v1633_v31 = vmul.f32 %v1626_v27, %v1620_v34  ;;  %v1634_v36 = vmul.f32 %v1630_v18, %v1619_v6  ;;  %v2079_v30 = vld [vmem:[%s2949_s2 + $0x10] ss:$8 sm:$0x3] }
 0x626   : > { %v1694_v37 = vpop.permute.xlu1 %1693 }
 0x627   : > { %1667 = vst [vmem:[#allocation2] sm:$0xf0] %v1663_v28  ;;  %1668 = vst [vmem:[#allocation2 + $0x8] sm:$0xf0] %v1664_v32  ;;  %v1635_v39 = vpack.c.bf16 %v1633_v31, %v1633_v31  ;;  %v1636_v41 = vpack.c.bf16 %v1634_v36, %v1634_v36  ;;  %v1696_v42 = vpop.permute.xlu0 %1695  ;;  %v1828_v31 = vrot.slane %v2079_v30, %v2295_v13 }
 0x628   : > { %v1697_v43 = vsel %vm518_vm4, %v1694_v37, %v1696_v42  ;;  %v1698_v60 = vsel %vm518_vm4, %v1696_v42, %v1694_v37  ;;  %v1832_v36 = vrot.slane %v2079_v30, %v2297_v14 }
 0x629   : > { %1637 = vst [vmem:[#allocation2] sm:$0xf] %v1635_v39  ;;  %1638 = vst [vmem:[#allocation2 + $0x8] sm:$0xf] %v1636_v41  ;;  %v1711_v0 = vmul.f32 %v1704_v8, %v1698_v60  ;;  %v1712_v49 = vmul.f32 %v1708_v35, %v1697_v43 }
 0x62a   : > { %v1670_v9 = vpop.permute.xlu1 %1669 }
 0x62b   : > { %v1713_v53 = vpack.c.bf16 %v1711_v0, %v1711_v0  ;;  %v1714_v40 = vpack.c.bf16 %v1712_v49, %v1712_v49  ;;  %v1672_v45 = vpop.permute.xlu0 %1671 }
 0x62c   : > { %v1673_v4 = vsel %vm484_vm3, %v1670_v9, %v1672_v45  ;;  %v1674_v44 = vsel %vm484_vm3, %v1672_v45, %v1670_v9 }
 0x62d   : > { %v1717_v47 = vrot.slane %v1713_v53, 4  ;;  %v1718_v50 = vrot.slane %v1714_v40, 4  ;;  %v1687_v17 = vmul.f32 %v1680_v2, %v1674_v44  ;;  %v1688_v1 = vmul.f32 %v1684_v61, %v1673_v4 }
 0x62e   : > { %v1734_v48 = vpop.permute.xlu1 %1733 }
 0x62f   : > { %1721 = vst [vmem:[#allocation2 + $0x10] sm:$0xf0] %v1717_v47  ;;  %1722 = vst [vmem:[#allocation2 + $0x18] sm:$0xf0] %v1718_v50  ;;  %v1689_v7 = vpack.c.bf16 %v1687_v17, %v1687_v17  ;;  %v1690_v5 = vpack.c.bf16 %v1688_v1, %v1688_v1  ;;  %v1736_v62 = vpop.permute.xlu0 %1735 }
 0x630   : > { %v1737_v51 = vsel %vm556_vm5, %v1734_v48, %v1736_v62  ;;  %v1738_v52 = vsel %vm556_vm5, %v1736_v62, %v1734_v48  ;;  %v1843_v11 = vld [vmem:[#allocation2 + $0x8] sm:$0xff]  ;;  %v1842_v55 = vld [vmem:[#allocation2] sm:$0xff] }
 0x631   : > { %1691 = vst [vmem:[#allocation2 + $0x10] sm:$0xf] %v1689_v7  ;;  %1692 = vst [vmem:[#allocation2 + $0x18] sm:$0xf] %v1690_v5  ;;  %v1751_v56 = vmul.f32 %v1744_v46, %v1737_v51  ;;  %v1752_v57 = vmul.f32 %v1748_v10, %v1738_v52  ;;  %1868 = vmatprep.subr.bf16.mxu1 %v1843_v11  ;;  %v1841_v46 = vld [vmem:[%s2954_s7] sm:$0x1] }
 0x632   : > { %1869 = vmatpush1.bf16.msra.mxu1 %v1842_v55  ;;  %v1788_v22 = vpop.permute.xlu1 %1787 }
 0x633   : > { %v1753_v19 = vpack.c.bf16 %v1751_v56, %v1751_v56  ;;  %v1754_v16 = vpack.c.bf16 %v1752_v57, %v1752_v57  ;;  %v1790_v23 = vpop.permute.xlu0 %1789 }
 0x634   : > { %v1791_v24 = vsel %vm624_vm7, %v1788_v22, %v1790_v23  ;;  %v1792_v21 = vsel %vm624_vm7, %v1790_v23, %v1788_v22 }
 0x635   : > { %v1757_v27 = vrot.slane %v1753_v19, 4  ;;  %v1758_v18 = vrot.slane %v1754_v16, 4  ;;  %v1805_v15 = vmul.f32 %v1798_v20, %v1791_v24  ;;  %v1806_v29 = vmul.f32 %v1802_v58, %v1792_v21 }
 0x636   : > { %v1764_v59 = vpop.permute.xlu1 %1763 }
 0x637   : > { %1761 = vst [vmem:[#allocation2 + $0x20] sm:$0xf0] %v1757_v27  ;;  %1762 = vst [vmem:[#allocation2 + $0x28] sm:$0xf0] %v1758_v18  ;;  %v1807_v33 = vpack.c.bf16 %v1805_v15, %v1805_v15  ;;  %v1808_v6 = vpack.c.bf16 %v1806_v29, %v1806_v29  ;;  %v1766_v34 = vpop.permute.xlu0 %1765 }
 0x638   : > { %v1767_v8 = vsel %vm590_vm6, %v1764_v59, %v1766_v34  ;;  %v1768_v35 = vsel %vm590_vm6, %v1766_v34, %v1764_v59  ;;  %v1845_v28 = vld [vmem:[#allocation2 + $0x18] sm:$0xff]  ;;  %v1844_v32 = vld [vmem:[#allocation2 + $0x10] sm:$0xff] }
 0x639   : > { %v1811_v37 = vrot.slane %v1807_v33, 4  ;;  %v1812_v38 = vrot.slane %v1808_v6, 4  ;;  %v1781_v39 = vmul.f32 %v1774_v25, %v1767_v8  ;;  %v1782_v41 = vmul.f32 %v1778_v26, %v1768_v35  ;;  %1870 = vmatprep.subr.bf16.mxu1 %v1845_v28 }
 0x63a   : > { %1871 = vmatpush1.bf16.msra.mxu1 %v1844_v32  ;;  %v1818_v42 = vpop.permute.xlu1 %1817 }
 0x63b   : > { %1815 = vst [vmem:[#allocation2 + $0x30] sm:$0xf0] %v1811_v37  ;;  %1816 = vst [vmem:[#allocation2 + $0x38] sm:$0xf0] %v1812_v38  ;;  %v1783_v43 = vpack.c.bf16 %v1781_v39, %v1781_v39  ;;  %v1784_v60 = vpack.c.bf16 %v1782_v41, %v1782_v41  ;;  %v1820_v0 = vpop.permute.xlu0 %1819 }
 0x63c   : > { %v1821_v49 = vsel %vm658_vm8, %v1818_v42, %v1820_v0  ;;  %v1822_v13 = vsel %vm658_vm8, %v1820_v0, %v1818_v42 }
 0x63d   : > { %1785 = vst [vmem:[#allocation2 + $0x30] sm:$0xf] %v1783_v43  ;;  %1786 = vst [vmem:[#allocation2 + $0x38] sm:$0xf] %v1784_v60  ;;  %v1835_v14 = vmul.f32 %v1828_v31, %v1821_v49  ;;  %v1836_v2 = vmul.f32 %v1832_v36, %v1822_v13 }
 0x63e   : > { %v1847_v61 = vld [vmem:[#allocation2 + $0x28] sm:$0xff]  ;;  %v1846_v54 = vld [vmem:[#allocation2 + $0x20] sm:$0xff] }
 0x63f   : > { %v1837_v9 = vpack.c.bf16 %v1835_v14, %v1835_v14  ;;  %v1838_v53 = vpack.c.bf16 %v1836_v2, %v1836_v2  ;;  %1872 = vmatprep.subr.bf16.mxu1 %v1847_v61 }
 0x640   : > { %1873 = vmatpush1.bf16.msra.mxu1 %v1846_v54 }
 0x641   : > { %1839 = vst [vmem:[#allocation2 + $0x40] sm:$0xf] %v1837_v9  ;;  %1840 = vst [vmem:[#allocation2 + $0x48] sm:$0xf] %v1838_v53 }
 0x644   : > { %v1849_v40 = vld [vmem:[#allocation2 + $0x38] sm:$0xff]  ;;  %v1848_v45 = vld [vmem:[#allocation2 + $0x30] sm:$0xff] }
 0x645   : > { %1874 = vmatprep.subr.bf16.mxu1 %v1849_v40 }
 0x646   : > { %1875 = vmatpush1.bf16.msra.mxu1 %v1848_v45 }
 0x648   : > { %v1851_v4 = vld [vmem:[#allocation2 + $0x48] sm:$0xf]  ;;  %v1850_v12 = vld [vmem:[#allocation2 + $0x40] sm:$0xf] }
 0x649   : > { %2080 = vmatprep.subr.msk.bf16.mxu1 %vm1606_vm14, %v1851_v4  ;;  %v1863_v44 = vsel %vm1606_vm14, %v1850_v12, 0 }
 0x64a   : > { %1877 = vmatpush1.bf16.msra.mxu1 %v1863_v44 }
 0x64b   : > { %v1856_v10 = vpop.permute.xlu1 %1855 }
 0x64d   : > { %2081 = vmatmul.mubr.msk.bf16.vlgmr.msra.gmra.mrb[8].mxu1 %vm1858_vm1, %v1841_v46 }
 0x720   : > { %v1902_v47 = vpop.f32.mrb[8].mxu1 }
 0x721   : > { %v1903_v50 = vadd.f32 %v1902_v47, %v1856_v10  ;;  %v1904_v17 = vpop.f32.mrb[9].mxu1 }
 0x722   : > { %v1905_v1 = vadd.f32 %v1904_v17, %v1856_v10  ;;  %v1906_v48 = vpop.f32.mrb[10].mxu1 }
 0x723   : > { %v1907_v3 = vpop.f32.mrb[11].mxu1 }
 0x724   : > { %v1911_v7 = vcombine.low %v1903_v50, %v1905_v1 }
 0x726   : > { %2082 = vst.sshfl [vmem:[%s389_s23] sm:$0x33 pattern:$0x76325410] %v1911_v7 }
 0x727 PF: > { %s21_s13 = sadd.s32 1, %s2123_s13  }
 0x728   : > { %p18_p4 = scmp.ge.s32.totalorder %s21_s13, 4  }
 0x72a   :  { %20 = sbr.rel (!%p18_p4) target bundleno = 1 (0x1), region = 112 }

</bundles_post_ra>
